<compile_context>
chip_gen: v6e
topology: v6e:2x2x1
jax: 0.10.0
libtpu: 0.0.40
codegen_flags: <defaults>
</compile_context>

<pallas_src>
import math
import functools

import jax
import jax.numpy as jnp
from jax import lax
from jax.experimental import pallas as pl
from jax.experimental.pallas import tpu as pltpu

_NEG_INF = -1e9


# ----------------------------- in-kernel helpers -----------------------------

def _erf_f32(x):
    # float32-accurate erf (rational approximation, max abs err ~1.2e-7) built
    # from Pallas-supported primitives (exp rides the EUP slot).
    z = jnp.abs(x)
    t = 1.0 / (1.0 + 0.5 * z)
    poly = -1.26551223 + t * (1.00002368 + t * (0.37409196 + t * (0.09678418 +
           t * (-0.18628806 + t * (0.27886807 + t * (-1.13520398 + t * (1.48851587 +
           t * (-0.82215223 + t * 0.17087277))))))))
    tau = t * jnp.exp(-z * z + poly)          # = erfc(|x|)
    return jnp.where(x >= 0.0, 1.0 - tau, tau - 1.0)


def _gelu_exact(x):
    # x * 0.5 * (1 + erf(x / sqrt(2)))  -- same formula as the PyTorch module.
    return x * 0.5 * (1.0 + _erf_f32(x * (1.0 / math.sqrt(2.0))))


def _layer_norm(x, gamma, beta, eps=1e-5):
    mean = jnp.mean(x, axis=-1, keepdims=True)
    c = x - mean
    var = jnp.mean(c * c, axis=-1, keepdims=True)
    return c * lax.rsqrt(var + eps) * gamma + beta


# --------------------------------- kernel ------------------------------------

def encoder_layer_kernel(num_heads,
                         x_ref, pos_ref, mask_ref,
                         wq_ref, wk_ref, wv_ref, wo_ref,
                         w1_ref, b1_ref, w2_ref, b2_ref,
                         g1_ref, be1_ref, g2_ref, be2_ref,
                         out_ref):
    Bb, T, D = x_ref.shape
    H = num_heads
    Dh = D // H
    f32, bf16 = jnp.float32, jnp.bfloat16

    # ---- hoisted parameter reads (once per grid step; weights already bf16) ----
    wq = wq_ref[...]                 # (D, D), pre-scaled by 1/sqrt(D) on host
    wk = wk_ref[...]
    wv = wv_ref[...]
    wo = wo_ref[...]
    w1 = w1_ref[...]                 # (D, Hd)
    w2 = w2_ref[...]                 # (Hd, D)
    b1 = b1_ref[...].astype(f32)     # (1, Hd)
    b2 = b2_ref[...].astype(f32)     # (1, D)
    g1 = g1_ref[...].astype(f32)     # (1, D)
    be1 = be1_ref[...].astype(f32)
    g2 = g2_ref[...].astype(f32)
    be2 = be2_ref[...].astype(f32)

    # ---- full-width projections on the flattened (Bb*T, D) slab ----
    x2d = x_ref[...].astype(f32).reshape(Bb * T, D)      # residual path in f32
    xb = x2d.astype(bf16)

    q2d = jnp.dot(xb, wq, preferred_element_type=f32)    # (Bb*T, D)  q pre-scaled
    k2d = jnp.dot(xb, wk, preferred_element_type=f32)
    v2d = jnp.dot(xb, wv, preferred_element_type=f32)

    q3 = q2d.astype(bf16).reshape(Bb, T, D)
    k3 = k2d.astype(bf16).reshape(Bb, T, D)
    v3 = v2d.astype(bf16).reshape(Bb, T, D)

    # additive key mask, already scaled by 1/sqrt(D): (Bb, 1, T)
    neg = mask_ref[...]

    # ---- scores / softmax / context: batched over the Bb rows, per head ----
    # (contraction is intrinsically K = Dh here; the static loop is over heads
    #  only, independent of Bb.  TODO(synk): fold heads into the batch dim via a
    #  (Bb*H, T, Dh) relayout once H grows large.)
    ctx_heads = []
    for h in range(H):
        lo, hi = h * Dh, (h + 1) * Dh
        qh = q3[:, :, lo:hi]                               # (Bb, T, Dh)
        kh = k3[:, :, lo:hi]
        vh = v3[:, :, lo:hi]

        s = jnp.einsum('bqd,bkd->bqk', qh, kh,
                       preferred_element_type=f32) + neg   # (Bb, T, T)

        m = jnp.max(s, axis=-1, keepdims=True)
        e = jnp.exp(s - m)
        p = e * pl.reciprocal(jnp.sum(e, axis=-1, keepdims=True), approx=True)

        ctx_heads.append(jnp.einsum('bqk,bkd->bqd', p.astype(bf16), vh,
                                    preferred_element_type=f32))  # (Bb, T, Dh)

    # merge heads -> (Bb*T, D), single full-width output projection (K = D)
    ctx2d = jnp.concatenate(ctx_heads, axis=-1).reshape(Bb * T, D).astype(bf16)
    attn2d = jnp.dot(ctx2d, wo, preferred_element_type=f32)          # (Bb*T, D)

    # ---- residual + LN1 + FFN + LN2 on the flattened slab ----
    pos2d = pos_ref[...].astype(f32).reshape(Bb * T, D)
    ff_in = _layer_norm(attn2d + pos2d + x2d, g1, be1)

    hid = _gelu_exact(
        jnp.dot(ff_in.astype(bf16), w1, preferred_element_type=f32) + b1)
    ff_out = jnp.dot(hid.astype(bf16), w2, preferred_element_type=f32) + b2

    out2d = _layer_norm(ff_out + ff_in, g2, be2)
    out_ref[...] = out2d.reshape(Bb, T, D).astype(out_ref.dtype)


# -------------------------------- wrapper -------------------------------------

def encoder_layer(x, pos, valid_lens, params, num_heads, batch_block=None):
    B, T, D = x.shape
    Hd = params["w1"].shape[1]
    H = num_heads
    assert D % H == 0

    # Batch rows per grid step.  Keep the grid length >= 2 (so the parallel axis
    # can be sharded across v7x's two TensorCores) and the per-step slab <= 512
    # rows; larger slabs mainly help v5e (HBM-bound) and can be passed explicitly.
    if batch_block is None:
        max_bb = max(1, B // 2)
        batch_block = 1
        for cand in range(max_bb, 0, -1):
            if B % cand == 0 and cand * T <= 512:
                batch_block = cand
                break
    Bb = batch_block
    assert B % Bb == 0

    bf16 = jnp.bfloat16
    scale = 1.0 / math.sqrt(D)   # PyTorch scales scores by sqrt(dim), not sqrt(head_dim)

    # Host-side (free) weight prep: bf16 for the MXU; Wq pre-scaled by 1/sqrt(D)
    # so the kernel never multiplies the (T, T) score tensor.
    wq = (params["wq"] * scale).astype(bf16)
    wk = params["wk"].astype(bf16)
    wv = params["wv"].astype(bf16)
    wo = params["wo"].astype(bf16)
    w1 = params["w1"].astype(bf16)
    w2 = params["w2"].astype(bf16)

    # Compact additive key mask (B, 1, T): 0 at valid keys, -1e9/sqrt(D) at padded
    # keys.  Since q is pre-scaled, logits match the reference
    # (q.k + mask) / sqrt(D) exactly.  Only B*T floats of HBM traffic.
    col = jnp.arange(T, dtype=jnp.int32)[None, :]
    add_mask = jnp.where(col < valid_lens.astype(jnp.int32)[:, None],
                         0.0, _NEG_INF * scale).astype(jnp.float32)
    add_mask = add_mask.reshape(B, 1, T)

    act_map = lambda i: (i, 0, 0)
    const2 = lambda i: (0, 0)

    grid_spec = pltpu.PrefetchScalarGridSpec(
        num_scalar_prefetch=0,
        grid=(B // Bb,),
        in_specs=[
            pl.BlockSpec((Bb, T, D), act_map),   # x
            pl.BlockSpec((Bb, T, D), act_map),   # position_info
            pl.BlockSpec((Bb, 1, T), act_map),   # additive key mask
            pl.BlockSpec((D, D), const2),        # Wq (pre-scaled)
            pl.BlockSpec((D, D), const2),        # Wk
            pl.BlockSpec((D, D), const2),        # Wv
            pl.BlockSpec((D, D), const2),        # Wo
            pl.BlockSpec((D, Hd), const2),       # W1
            pl.BlockSpec((1, Hd), const2),       # b1
            pl.BlockSpec((Hd, D), const2),       # W2
            pl.BlockSpec((1, D), const2),        # b2
            pl.BlockSpec((1, D), const2),        # LN1 gamma
            pl.BlockSpec((1, D), const2),        # LN1 beta
            pl.BlockSpec((1, D), const2),        # LN2 gamma
            pl.BlockSpec((1, D), const2),        # LN2 beta
        ],
        out_specs=pl.BlockSpec((Bb, T, D), act_map),
    )

    kernel = functools.partial(encoder_layer_kernel, num_heads)
    return pl.pallas_call(
        kernel,
        out_shape=jax.ShapeDtypeStruct((B, T, D), x.dtype),
        grid_spec=grid_spec,
        compiler_params=pltpu.CompilerParams(
            dimension_semantics=("parallel",),
            vmem_limit_bytes=48 * 1024 * 1024),
    )(x, pos, add_mask,
      wq, wk, wv, wo,
      w1, params["b1"], w2, params["b2"],
      params["g1"], params["be1"], params["g2"], params["be2"])


# ------------------------- pure-JAX reference (for check) ---------------------

def encoder_layer_ref(x, pos, valid_lens, params, num_heads):
    B, T, D = x.shape
    H, Dh = num_heads, D // num_heads

    key_valid = (jnp.arange(T)[None, :] < valid_lens[:, None]).astype(jnp.float32)
    mask = jnp.broadcast_to(((1.0 - key_valid) * -1e9)[:, None, :], (B, T, T))

    def ln(v, g, b, eps=1e-5):
        mu = jnp.mean(v, axis=-1, keepdims=True)
        var = jnp.mean((v - mu) ** 2, axis=-1, keepdims=True)
        return (v - mu) / jnp.sqrt(var + eps) * g + b

    q = x @ params["wq"]
    k = x @ params["wk"]
    v = x @ params["wv"]
    q = q.reshape(B, T, H, Dh).transpose(0, 2, 1, 3)
    k = k.reshape(B, T, H, Dh).transpose(0, 2, 3, 1)
    v = v.reshape(B, T, H, Dh).transpose(0, 2, 1, 3)
    w = jnp.matmul(q, k) + mask[:, None, :, :]
    w = jax.nn.softmax(w / math.sqrt(D), axis=-1)
    ctx = jnp.matmul(w, v).transpose(0, 2, 1, 3).reshape(B, T, D)
    attn = ctx @ params["wo"]

    res1 = attn + pos + x
    ff_in = ln(res1, params["g1"][0], params["be1"][0])
    h = ff_in @ params["w1"] + params["b1"][0]
    h = h * 0.5 * (1.0 + lax.erf(h / math.sqrt(2.0)))
    ff_out = h @ params["w2"] + params["b2"][0]
    return ln(ff_out + ff_in, params["g2"][0], params["be2"][0])


# ---------------------------------- main --------------------------------------

if __name__ == "__main__":
    B, T, D = 2, 8, 32
    num_heads = 4
    hidden_multiplier = 2
    Hd = D * hidden_multiplier
    std = 0.02  # initialize_layers(weight_std=0.02)

    key = jax.random.PRNGKey(0)
    keys = jax.random.split(key, 10)

    params = {
        # linear weights stored as (in_dim, out_dim) == PyTorch weight.T
        "wq": std * jax.random.normal(keys[0], (D, D), jnp.float32),
        "wk": std * jax.random.normal(keys[1], (D, D), jnp.float32),
        "wv": std * jax.random.normal(keys[2], (D, D), jnp.float32),
        "wo": std * jax.random.normal(keys[3], (D, D), jnp.float32),
        "w1": std * jax.random.normal(keys[4], (D, Hd), jnp.float32),
        "b1": jnp.zeros((1, Hd), jnp.float32),
        "w2": std * jax.random.normal(keys[5], (Hd, D), jnp.float32),
        "b2": jnp.zeros((1, D), jnp.float32),
        # LayerNorm params keep PyTorch defaults (ones / zeros)
        "g1": jnp.ones((1, D), jnp.float32),
        "be1": jnp.zeros((1, D), jnp.float32),
        "g2": jnp.ones((1, D), jnp.float32),
        "be2": jnp.zeros((1, D), jnp.float32),
    }

    x = jax.random.normal(keys[6], (B, T, D), jnp.float32)
    pos = jax.random.normal(keys[7], (B, T, D), jnp.float32)

    # batch 0 attends everywhere, batch 1 has its last 2 key positions masked
    valid_lens = jnp.array([T, T - 2], jnp.int32)

    out = encoder_layer(x, pos, valid_lens, params, num_heads)
    out = jax.block_until_ready(out)

    ref = encoder_layer_ref(x, pos, valid_lens, params, num_heads)
    assert out.shape == (B, T, D)
    assert bool(jnp.all(jnp.isfinite(out)))
    # generous tolerance: kernel uses bf16 MXU operands + approx reciprocal
    assert bool(jnp.allclose(out, ref, atol=3e-2, rtol=3e-2)), (
        float(jnp.max(jnp.abs(out - ref))))

    print("KERNEL_OK")
</pallas_src>

<mosaic_0001>
module attributes {stable_mosaic.version = 11 : i64} {
  func.func @encoder_layer_kernel(%arg0: i32, %arg1: memref<1x8x32xf32, #tpu.memory_space<vmem>>, %arg2: memref<1x8x32xf32, #tpu.memory_space<vmem>>, %arg3: memref<1x1x8xf32, #tpu.memory_space<vmem>>, %arg4: memref<32x32xbf16, #tpu.memory_space<vmem>>, %arg5: memref<32x32xbf16, #tpu.memory_space<vmem>>, %arg6: memref<32x32xbf16, #tpu.memory_space<vmem>>, %arg7: memref<32x32xbf16, #tpu.memory_space<vmem>>, %arg8: memref<32x64xbf16, #tpu.memory_space<vmem>>, %arg9: memref<1x64xf32, #tpu.memory_space<vmem>>, %arg10: memref<64x32xbf16, #tpu.memory_space<vmem>>, %arg11: memref<1x32xf32, #tpu.memory_space<vmem>>, %arg12: memref<1x32xf32, #tpu.memory_space<vmem>>, %arg13: memref<1x32xf32, #tpu.memory_space<vmem>>, %arg14: memref<1x32xf32, #tpu.memory_space<vmem>>, %arg15: memref<1x32xf32, #tpu.memory_space<vmem>>, %arg16: memref<1x8x32xf32, #tpu.memory_space<vmem>>) attributes {dimension_semantics = [#tpu.dimension_semantics<parallel>], iteration_bounds = array<i64: 2>, scalar_prefetch = 0 : i64, scratch_operands = 0 : i64, tpu.core_type = #tpu.core_type<tc>, window_params = [{transform_indices = @transform_0, window_bounds = array<i64: 1, 8, 32>}, {transform_indices = @transform_1, window_bounds = array<i64: 1, 8, 32>}, {transform_indices = @transform_2, window_bounds = array<i64: 1, 1, 8>}, {pipeline_mode = #tpu.pipeline_mode<synchronous>, transform_indices = @transform_3, window_bounds = array<i64: 32, 32>}, {pipeline_mode = #tpu.pipeline_mode<synchronous>, transform_indices = @transform_4, window_bounds = array<i64: 32, 32>}, {pipeline_mode = #tpu.pipeline_mode<synchronous>, transform_indices = @transform_5, window_bounds = array<i64: 32, 32>}, {pipeline_mode = #tpu.pipeline_mode<synchronous>, transform_indices = @transform_6, window_bounds = array<i64: 32, 32>}, {pipeline_mode = #tpu.pipeline_mode<synchronous>, transform_indices = @transform_7, window_bounds = array<i64: 32, 64>}, {pipeline_mode = #tpu.pipeline_mode<synchronous>, transform_indices = @transform_8, window_bounds = array<i64: 1, 64>}, {pipeline_mode = #tpu.pipeline_mode<synchronous>, transform_indices = @transform_9, window_bounds = array<i64: 64, 32>}, {pipeline_mode = #tpu.pipeline_mode<synchronous>, transform_indices = @transform_10, window_bounds = array<i64: 1, 32>}, {pipeline_mode = #tpu.pipeline_mode<synchronous>, transform_indices = @transform_11, window_bounds = array<i64: 1, 32>}, {pipeline_mode = #tpu.pipeline_mode<synchronous>, transform_indices = @transform_12, window_bounds = array<i64: 1, 32>}, {pipeline_mode = #tpu.pipeline_mode<synchronous>, transform_indices = @transform_13, window_bounds = array<i64: 1, 32>}, {pipeline_mode = #tpu.pipeline_mode<synchronous>, transform_indices = @transform_14, window_bounds = array<i64: 1, 32>}, {transform_indices = @transform_15, window_bounds = array<i64: 1, 8, 32>}]} {
    %c0 = arith.constant 0 : index
    %c0_0 = arith.constant 0 : index
    %0 = vector.load %arg4[%c0, %c0_0] : memref<32x32xbf16, #tpu.memory_space<vmem>>, vector<32x32xbf16>
    %c0_1 = arith.constant 0 : index
    %c0_2 = arith.constant 0 : index
    %1 = vector.load %arg5[%c0_1, %c0_2] : memref<32x32xbf16, #tpu.memory_space<vmem>>, vector<32x32xbf16>
    %c0_3 = arith.constant 0 : index
    %c0_4 = arith.constant 0 : index
    %2 = vector.load %arg6[%c0_3, %c0_4] : memref<32x32xbf16, #tpu.memory_space<vmem>>, vector<32x32xbf16>
    %c0_5 = arith.constant 0 : index
    %c0_6 = arith.constant 0 : index
    %3 = vector.load %arg7[%c0_5, %c0_6] : memref<32x32xbf16, #tpu.memory_space<vmem>>, vector<32x32xbf16>
    %c0_7 = arith.constant 0 : index
    %c0_8 = arith.constant 0 : index
    %4 = vector.load %arg8[%c0_7, %c0_8] : memref<32x64xbf16, #tpu.memory_space<vmem>>, vector<32x64xbf16>
    %c0_9 = arith.constant 0 : index
    %c0_10 = arith.constant 0 : index
    %5 = vector.load %arg10[%c0_9, %c0_10] : memref<64x32xbf16, #tpu.memory_space<vmem>>, vector<64x32xbf16>
    %c0_11 = arith.constant 0 : index
    %c0_12 = arith.constant 0 : index
    %6 = vector.load %arg9[%c0_11, %c0_12] : memref<1x64xf32, #tpu.memory_space<vmem>>, vector<1x64xf32>
    %c0_13 = arith.constant 0 : index
    %c0_14 = arith.constant 0 : index
    %7 = vector.load %arg11[%c0_13, %c0_14] : memref<1x32xf32, #tpu.memory_space<vmem>>, vector<1x32xf32>
    %c0_15 = arith.constant 0 : index
    %c0_16 = arith.constant 0 : index
    %8 = vector.load %arg12[%c0_15, %c0_16] : memref<1x32xf32, #tpu.memory_space<vmem>>, vector<1x32xf32>
    %c0_17 = arith.constant 0 : index
    %c0_18 = arith.constant 0 : index
    %9 = vector.load %arg13[%c0_17, %c0_18] : memref<1x32xf32, #tpu.memory_space<vmem>>, vector<1x32xf32>
    %c0_19 = arith.constant 0 : index
    %c0_20 = arith.constant 0 : index
    %10 = vector.load %arg14[%c0_19, %c0_20] : memref<1x32xf32, #tpu.memory_space<vmem>>, vector<1x32xf32>
    %c0_21 = arith.constant 0 : index
    %c0_22 = arith.constant 0 : index
    %11 = vector.load %arg15[%c0_21, %c0_22] : memref<1x32xf32, #tpu.memory_space<vmem>>, vector<1x32xf32>
    %c0_23 = arith.constant 0 : index
    %c0_24 = arith.constant 0 : index
    %c0_25 = arith.constant 0 : index
    %12 = vector.load %arg1[%c0_23, %c0_24, %c0_25] : memref<1x8x32xf32, #tpu.memory_space<vmem>>, vector<1x8x32xf32>
    %13 = vector.shape_cast %12 : vector<1x8x32xf32> to vector<8x32xf32>
    %14 = arith.truncf %13 : vector<8x32xf32> to vector<8x32xbf16>
    %cst = arith.constant dense<0.000000e+00> : vector<8x32xf32>
    %15 = tpu.matmul %14, %0, %cst {dimension_numbers = #tpu.dot_dimension_numbers<[1], [0], [0], [1], [0, 0, 1, 1], [], []>} : vector<8x32xbf16>, vector<32x32xbf16>, vector<8x32xf32> -> vector<8x32xf32>
    %cst_26 = arith.constant dense<0.000000e+00> : vector<8x32xf32>
    %16 = tpu.matmul %14, %1, %cst_26 {dimension_numbers = #tpu.dot_dimension_numbers<[1], [0], [0], [1], [0, 0, 1, 1], [], []>} : vector<8x32xbf16>, vector<32x32xbf16>, vector<8x32xf32> -> vector<8x32xf32>
    %cst_27 = arith.constant dense<0.000000e+00> : vector<8x32xf32>
    %17 = tpu.matmul %14, %2, %cst_27 {dimension_numbers = #tpu.dot_dimension_numbers<[1], [0], [0], [1], [0, 0, 1, 1], [], []>} : vector<8x32xbf16>, vector<32x32xbf16>, vector<8x32xf32> -> vector<8x32xf32>
    %18 = arith.truncf %15 : vector<8x32xf32> to vector<8x32xbf16>
    %19 = vector.shape_cast %18 : vector<8x32xbf16> to vector<1x8x32xbf16>
    %20 = arith.truncf %16 : vector<8x32xf32> to vector<8x32xbf16>
    %21 = vector.shape_cast %20 : vector<8x32xbf16> to vector<1x8x32xbf16>
    %22 = arith.truncf %17 : vector<8x32xf32> to vector<8x32xbf16>
    %23 = vector.shape_cast %22 : vector<8x32xbf16> to vector<1x8x32xbf16>
    %c0_28 = arith.constant 0 : index
    %c0_29 = arith.constant 0 : index
    %c0_30 = arith.constant 0 : index
    %24 = vector.load %arg3[%c0_28, %c0_29, %c0_30] : memref<1x1x8xf32, #tpu.memory_space<vmem>>, vector<1x1x8xf32>
    %25 = vector.extract_strided_slice %19 {offsets = [0, 0, 0], sizes = [1, 8, 8], strides = [1, 1, 1]} : vector<1x8x32xbf16> to vector<1x8x8xbf16>
    %26 = vector.extract_strided_slice %21 {offsets = [0, 0, 0], sizes = [1, 8, 8], strides = [1, 1, 1]} : vector<1x8x32xbf16> to vector<1x8x8xbf16>
    %27 = vector.extract_strided_slice %23 {offsets = [0, 0, 0], sizes = [1, 8, 8], strides = [1, 1, 1]} : vector<1x8x32xbf16> to vector<1x8x8xbf16>
    "tpu.trace_start"() <{level = 10 : i32, message = "bqd,bkd->bqk"}> : () -> ()
    %cst_31 = arith.constant dense<0.000000e+00> : vector<1x8x8xf32>
    %28 = tpu.matmul %25, %26, %cst_31 {dimension_numbers = #tpu.dot_dimension_numbers<[2], [2], [1], [1], [0, 0, 0, 1, 1, 1], [0], [0]>} : vector<1x8x8xbf16>, vector<1x8x8xbf16>, vector<1x8x8xf32> -> vector<1x8x8xf32>
    "tpu.trace_stop"() : () -> ()
    %29 = vector.broadcast %24 : vector<1x1x8xf32> to vector<1x8x8xf32>
    %30 = arith.addf %28, %29 : vector<1x8x8xf32>
    %cst_32 = arith.constant dense<0xFF800000> : vector<1x8xf32>
    %31 = vector.multi_reduction <maximumf>, %30, %cst_32 [2] : vector<1x8x8xf32> to vector<1x8xf32>
    %32 = vector.shape_cast %31 : vector<1x8xf32> to vector<1x8x1xf32>
    %33 = vector.broadcast %32 : vector<1x8x1xf32> to vector<1x8x8xf32>
    %34 = arith.subf %30, %33 : vector<1x8x8xf32>
    %35 = math.exp %34 : vector<1x8x8xf32>
    %cst_33 = arith.constant dense<0.000000e+00> : vector<1x8xf32>
    %36 = vector.multi_reduction <add>, %35, %cst_33 [2] : vector<1x8x8xf32> to vector<1x8xf32>
    %37 = vector.shape_cast %36 : vector<1x8xf32> to vector<1x8x1xf32>
    %38 = tpu.reciprocal %37 {approx = true} : vector<1x8x1xf32> -> vector<1x8x1xf32>
    %39 = vector.broadcast %38 : vector<1x8x1xf32> to vector<1x8x8xf32>
    %40 = arith.mulf %35, %39 : vector<1x8x8xf32>
    %41 = arith.truncf %40 : vector<1x8x8xf32> to vector<1x8x8xbf16>
    "tpu.trace_start"() <{level = 10 : i32, message = "bqk,bkd->bqd"}> : () -> ()
    %cst_34 = arith.constant dense<0.000000e+00> : vector<1x8x8xf32>
    %42 = tpu.matmul %41, %27, %cst_34 {dimension_numbers = #tpu.dot_dimension_numbers<[2], [1], [1], [2], [0, 0, 0, 1, 1, 2], [0], [0]>} : vector<1x8x8xbf16>, vector<1x8x8xbf16>, vector<1x8x8xf32> -> vector<1x8x8xf32>
    "tpu.trace_stop"() : () -> ()
    %43 = vector.extract_strided_slice %19 {offsets = [0, 0, 8], sizes = [1, 8, 8], strides = [1, 1, 1]} : vector<1x8x32xbf16> to vector<1x8x8xbf16>
    %44 = vector.extract_strided_slice %21 {offsets = [0, 0, 8], sizes = [1, 8, 8], strides = [1, 1, 1]} : vector<1x8x32xbf16> to vector<1x8x8xbf16>
    %45 = vector.extract_strided_slice %23 {offsets = [0, 0, 8], sizes = [1, 8, 8], strides = [1, 1, 1]} : vector<1x8x32xbf16> to vector<1x8x8xbf16>
    "tpu.trace_start"() <{level = 10 : i32, message = "bqd,bkd->bqk"}> : () -> ()
    %cst_35 = arith.constant dense<0.000000e+00> : vector<1x8x8xf32>
    %46 = tpu.matmul %43, %44, %cst_35 {dimension_numbers = #tpu.dot_dimension_numbers<[2], [2], [1], [1], [0, 0, 0, 1, 1, 1], [0], [0]>} : vector<1x8x8xbf16>, vector<1x8x8xbf16>, vector<1x8x8xf32> -> vector<1x8x8xf32>
    "tpu.trace_stop"() : () -> ()
    %47 = vector.broadcast %24 : vector<1x1x8xf32> to vector<1x8x8xf32>
    %48 = arith.addf %46, %47 : vector<1x8x8xf32>
    %cst_36 = arith.constant dense<0xFF800000> : vector<1x8xf32>
    %49 = vector.multi_reduction <maximumf>, %48, %cst_36 [2] : vector<1x8x8xf32> to vector<1x8xf32>
    %50 = vector.shape_cast %49 : vector<1x8xf32> to vector<1x8x1xf32>
    %51 = vector.broadcast %50 : vector<1x8x1xf32> to vector<1x8x8xf32>
    %52 = arith.subf %48, %51 : vector<1x8x8xf32>
    %53 = math.exp %52 : vector<1x8x8xf32>
    %cst_37 = arith.constant dense<0.000000e+00> : vector<1x8xf32>
    %54 = vector.multi_reduction <add>, %53, %cst_37 [2] : vector<1x8x8xf32> to vector<1x8xf32>
    %55 = vector.shape_cast %54 : vector<1x8xf32> to vector<1x8x1xf32>
    %56 = tpu.reciprocal %55 {approx = true} : vector<1x8x1xf32> -> vector<1x8x1xf32>
    %57 = vector.broadcast %56 : vector<1x8x1xf32> to vector<1x8x8xf32>
    %58 = arith.mulf %53, %57 : vector<1x8x8xf32>
    %59 = arith.truncf %58 : vector<1x8x8xf32> to vector<1x8x8xbf16>
    "tpu.trace_start"() <{level = 10 : i32, message = "bqk,bkd->bqd"}> : () -> ()
    %cst_38 = arith.constant dense<0.000000e+00> : vector<1x8x8xf32>
    %60 = tpu.matmul %59, %45, %cst_38 {dimension_numbers = #tpu.dot_dimension_numbers<[2], [1], [1], [2], [0, 0, 0, 1, 1, 2], [0], [0]>} : vector<1x8x8xbf16>, vector<1x8x8xbf16>, vector<1x8x8xf32> -> vector<1x8x8xf32>
    "tpu.trace_stop"() : () -> ()
    %61 = vector.extract_strided_slice %19 {offsets = [0, 0, 16], sizes = [1, 8, 8], strides = [1, 1, 1]} : vector<1x8x32xbf16> to vector<1x8x8xbf16>
    %62 = vector.extract_strided_slice %21 {offsets = [0, 0, 16], sizes = [1, 8, 8], strides = [1, 1, 1]} : vector<1x8x32xbf16> to vector<1x8x8xbf16>
    %63 = vector.extract_strided_slice %23 {offsets = [0, 0, 16], sizes = [1, 8, 8], strides = [1, 1, 1]} : vector<1x8x32xbf16> to vector<1x8x8xbf16>
    "tpu.trace_start"() <{level = 10 : i32, message = "bqd,bkd->bqk"}> : () -> ()
    %cst_39 = arith.constant dense<0.000000e+00> : vector<1x8x8xf32>
    %64 = tpu.matmul %61, %62, %cst_39 {dimension_numbers = #tpu.dot_dimension_numbers<[2], [2], [1], [1], [0, 0, 0, 1, 1, 1], [0], [0]>} : vector<1x8x8xbf16>, vector<1x8x8xbf16>, vector<1x8x8xf32> -> vector<1x8x8xf32>
    "tpu.trace_stop"() : () -> ()
    %65 = vector.broadcast %24 : vector<1x1x8xf32> to vector<1x8x8xf32>
    %66 = arith.addf %64, %65 : vector<1x8x8xf32>
    %cst_40 = arith.constant dense<0xFF800000> : vector<1x8xf32>
    %67 = vector.multi_reduction <maximumf>, %66, %cst_40 [2] : vector<1x8x8xf32> to vector<1x8xf32>
    %68 = vector.shape_cast %67 : vector<1x8xf32> to vector<1x8x1xf32>
    %69 = vector.broadcast %68 : vector<1x8x1xf32> to vector<1x8x8xf32>
    %70 = arith.subf %66, %69 : vector<1x8x8xf32>
    %71 = math.exp %70 : vector<1x8x8xf32>
    %cst_41 = arith.constant dense<0.000000e+00> : vector<1x8xf32>
    %72 = vector.multi_reduction <add>, %71, %cst_41 [2] : vector<1x8x8xf32> to vector<1x8xf32>
    %73 = vector.shape_cast %72 : vector<1x8xf32> to vector<1x8x1xf32>
    %74 = tpu.reciprocal %73 {approx = true} : vector<1x8x1xf32> -> vector<1x8x1xf32>
    %75 = vector.broadcast %74 : vector<1x8x1xf32> to vector<1x8x8xf32>
    %76 = arith.mulf %71, %75 : vector<1x8x8xf32>
    %77 = arith.truncf %76 : vector<1x8x8xf32> to vector<1x8x8xbf16>
    "tpu.trace_start"() <{level = 10 : i32, message = "bqk,bkd->bqd"}> : () -> ()
    %cst_42 = arith.constant dense<0.000000e+00> : vector<1x8x8xf32>
    %78 = tpu.matmul %77, %63, %cst_42 {dimension_numbers = #tpu.dot_dimension_numbers<[2], [1], [1], [2], [0, 0, 0, 1, 1, 2], [0], [0]>} : vector<1x8x8xbf16>, vector<1x8x8xbf16>, vector<1x8x8xf32> -> vector<1x8x8xf32>
    "tpu.trace_stop"() : () -> ()
    %79 = vector.extract_strided_slice %19 {offsets = [0, 0, 24], sizes = [1, 8, 8], strides = [1, 1, 1]} : vector<1x8x32xbf16> to vector<1x8x8xbf16>
    %80 = vector.extract_strided_slice %21 {offsets = [0, 0, 24], sizes = [1, 8, 8], strides = [1, 1, 1]} : vector<1x8x32xbf16> to vector<1x8x8xbf16>
    %81 = vector.extract_strided_slice %23 {offsets = [0, 0, 24], sizes = [1, 8, 8], strides = [1, 1, 1]} : vector<1x8x32xbf16> to vector<1x8x8xbf16>
    "tpu.trace_start"() <{level = 10 : i32, message = "bqd,bkd->bqk"}> : () -> ()
    %cst_43 = arith.constant dense<0.000000e+00> : vector<1x8x8xf32>
    %82 = tpu.matmul %79, %80, %cst_43 {dimension_numbers = #tpu.dot_dimension_numbers<[2], [2], [1], [1], [0, 0, 0, 1, 1, 1], [0], [0]>} : vector<1x8x8xbf16>, vector<1x8x8xbf16>, vector<1x8x8xf32> -> vector<1x8x8xf32>
    "tpu.trace_stop"() : () -> ()
    %83 = vector.broadcast %24 : vector<1x1x8xf32> to vector<1x8x8xf32>
    %84 = arith.addf %82, %83 : vector<1x8x8xf32>
    %cst_44 = arith.constant dense<0xFF800000> : vector<1x8xf32>
    %85 = vector.multi_reduction <maximumf>, %84, %cst_44 [2] : vector<1x8x8xf32> to vector<1x8xf32>
    %86 = vector.shape_cast %85 : vector<1x8xf32> to vector<1x8x1xf32>
    %87 = vector.broadcast %86 : vector<1x8x1xf32> to vector<1x8x8xf32>
    %88 = arith.subf %84, %87 : vector<1x8x8xf32>
    %89 = math.exp %88 : vector<1x8x8xf32>
    %cst_45 = arith.constant dense<0.000000e+00> : vector<1x8xf32>
    %90 = vector.multi_reduction <add>, %89, %cst_45 [2] : vector<1x8x8xf32> to vector<1x8xf32>
    %91 = vector.shape_cast %90 : vector<1x8xf32> to vector<1x8x1xf32>
    %92 = tpu.reciprocal %91 {approx = true} : vector<1x8x1xf32> -> vector<1x8x1xf32>
    %93 = vector.broadcast %92 : vector<1x8x1xf32> to vector<1x8x8xf32>
    %94 = arith.mulf %89, %93 : vector<1x8x8xf32>
    %95 = arith.truncf %94 : vector<1x8x8xf32> to vector<1x8x8xbf16>
    "tpu.trace_start"() <{level = 10 : i32, message = "bqk,bkd->bqd"}> : () -> ()
    %cst_46 = arith.constant dense<0.000000e+00> : vector<1x8x8xf32>
    %96 = tpu.matmul %95, %81, %cst_46 {dimension_numbers = #tpu.dot_dimension_numbers<[2], [1], [1], [2], [0, 0, 0, 1, 1, 2], [0], [0]>} : vector<1x8x8xbf16>, vector<1x8x8xbf16>, vector<1x8x8xf32> -> vector<1x8x8xf32>
    "tpu.trace_stop"() : () -> ()
    %97 = tpu.concatenate %42, %60, %78, %96 in 2 : vector<1x8x8xf32>, vector<1x8x8xf32>, vector<1x8x8xf32>, vector<1x8x8xf32> -> vector<1x8x32xf32>
    %98 = vector.shape_cast %97 : vector<1x8x32xf32> to vector<8x32xf32>
    %99 = arith.truncf %98 : vector<8x32xf32> to vector<8x32xbf16>
    %cst_47 = arith.constant dense<0.000000e+00> : vector<8x32xf32>
    %100 = tpu.matmul %99, %3, %cst_47 {dimension_numbers = #tpu.dot_dimension_numbers<[1], [0], [0], [1], [0, 0, 1, 1], [], []>} : vector<8x32xbf16>, vector<32x32xbf16>, vector<8x32xf32> -> vector<8x32xf32>
    %c0_48 = arith.constant 0 : index
    %c0_49 = arith.constant 0 : index
    %c0_50 = arith.constant 0 : index
    %101 = vector.load %arg2[%c0_48, %c0_49, %c0_50] : memref<1x8x32xf32, #tpu.memory_space<vmem>>, vector<1x8x32xf32>
    %102 = vector.shape_cast %101 : vector<1x8x32xf32> to vector<8x32xf32>
    %103 = arith.addf %100, %102 : vector<8x32xf32>
    %104 = arith.addf %103, %13 : vector<8x32xf32>
    %cst_51 = arith.constant dense<0.000000e+00> : vector<8xf32>
    %105 = vector.multi_reduction <add>, %104, %cst_51 [1] : vector<8x32xf32> to vector<8xf32>
    %106 = vector.shape_cast %105 : vector<8xf32> to vector<8x1xf32>
    %cst_52 = arith.constant 3.200000e+01 : f32
    %107 = vector.broadcast %cst_52 : f32 to vector<8x1xf32>
    %108 = arith.divf %106, %107 : vector<8x1xf32>
    %109 = vector.broadcast %108 : vector<8x1xf32> to vector<8x32xf32>
    %110 = arith.subf %104, %109 : vector<8x32xf32>
    %111 = arith.mulf %110, %110 : vector<8x32xf32>
    %cst_53 = arith.constant dense<0.000000e+00> : vector<8xf32>
    %112 = vector.multi_reduction <add>, %111, %cst_53 [1] : vector<8x32xf32> to vector<8xf32>
    %113 = vector.shape_cast %112 : vector<8xf32> to vector<8x1xf32>
    %cst_54 = arith.constant 3.200000e+01 : f32
    %114 = vector.broadcast %cst_54 : f32 to vector<8x1xf32>
    %115 = arith.divf %113, %114 : vector<8x1xf32>
    %cst_55 = arith.constant 9.99999974E-6 : f32
    %116 = vector.broadcast %cst_55 : f32 to vector<8x1xf32>
    %117 = arith.addf %115, %116 : vector<8x1xf32>
    %118 = math.rsqrt %117 : vector<8x1xf32>
    %119 = vector.broadcast %118 : vector<8x1xf32> to vector<8x32xf32>
    %120 = arith.mulf %110, %119 : vector<8x32xf32>
    %121 = vector.broadcast %8 : vector<1x32xf32> to vector<8x32xf32>
    %122 = arith.mulf %120, %121 : vector<8x32xf32>
    %123 = vector.broadcast %9 : vector<1x32xf32> to vector<8x32xf32>
    %124 = arith.addf %122, %123 : vector<8x32xf32>
    %125 = arith.truncf %124 : vector<8x32xf32> to vector<8x32xbf16>
    %cst_56 = arith.constant dense<0.000000e+00> : vector<8x64xf32>
    %126 = tpu.matmul %125, %4, %cst_56 {dimension_numbers = #tpu.dot_dimension_numbers<[1], [0], [0], [1], [0, 0, 1, 1], [], []>} : vector<8x32xbf16>, vector<32x64xbf16>, vector<8x64xf32> -> vector<8x64xf32>
    %127 = vector.broadcast %6 : vector<1x64xf32> to vector<8x64xf32>
    %128 = arith.addf %126, %127 : vector<8x64xf32>
    %cst_57 = arith.constant 5.000000e-01 : f32
    %129 = vector.broadcast %cst_57 : f32 to vector<8x64xf32>
    %130 = arith.mulf %128, %129 : vector<8x64xf32>
    %cst_58 = arith.constant 0.707106769 : f32
    %131 = vector.broadcast %cst_58 : f32 to vector<8x64xf32>
    %132 = arith.mulf %128, %131 : vector<8x64xf32>
    %133 = math.absf %132 : vector<8x64xf32>
    %cst_59 = arith.constant 5.000000e-01 : f32
    %134 = vector.broadcast %cst_59 : f32 to vector<8x64xf32>
    %135 = arith.mulf %134, %133 : vector<8x64xf32>
    %cst_60 = arith.constant 1.000000e+00 : f32
    %136 = vector.broadcast %cst_60 : f32 to vector<8x64xf32>
    %137 = arith.addf %136, %135 : vector<8x64xf32>
    %cst_61 = arith.constant 1.000000e+00 : f32
    %138 = vector.broadcast %cst_61 : f32 to vector<8x64xf32>
    %139 = arith.divf %138, %137 : vector<8x64xf32>
    %cst_62 = arith.constant 0.170872763 : f32
    %140 = vector.broadcast %cst_62 : f32 to vector<8x64xf32>
    %141 = arith.mulf %139, %140 : vector<8x64xf32>
    %cst_63 = arith.constant -0.822152256 : f32
    %142 = vector.broadcast %cst_63 : f32 to vector<8x64xf32>
    %143 = arith.addf %142, %141 : vector<8x64xf32>
    %144 = arith.mulf %139, %143 : vector<8x64xf32>
    %cst_64 = arith.constant 1.48851585 : f32
    %145 = vector.broadcast %cst_64 : f32 to vector<8x64xf32>
    %146 = arith.addf %145, %144 : vector<8x64xf32>
    %147 = arith.mulf %139, %146 : vector<8x64xf32>
    %cst_65 = arith.constant -1.13520396 : f32
    %148 = vector.broadcast %cst_65 : f32 to vector<8x64xf32>
    %149 = arith.addf %148, %147 : vector<8x64xf32>
    %150 = arith.mulf %139, %149 : vector<8x64xf32>
    %cst_66 = arith.constant 0.278868079 : f32
    %151 = vector.broadcast %cst_66 : f32 to vector<8x64xf32>
    %152 = arith.addf %151, %150 : vector<8x64xf32>
    %153 = arith.mulf %139, %152 : vector<8x64xf32>
    %cst_67 = arith.constant -0.186288059 : f32
    %154 = vector.broadcast %cst_67 : f32 to vector<8x64xf32>
    %155 = arith.addf %154, %153 : vector<8x64xf32>
    %156 = arith.mulf %139, %155 : vector<8x64xf32>
    %cst_68 = arith.constant 0.0967841818 : f32
    %157 = vector.broadcast %cst_68 : f32 to vector<8x64xf32>
    %158 = arith.addf %157, %156 : vector<8x64xf32>
    %159 = arith.mulf %139, %158 : vector<8x64xf32>
    %cst_69 = arith.constant 0.374091953 : f32
    %160 = vector.broadcast %cst_69 : f32 to vector<8x64xf32>
    %161 = arith.addf %160, %159 : vector<8x64xf32>
    %162 = arith.mulf %139, %161 : vector<8x64xf32>
    %cst_70 = arith.constant 1.00002372 : f32
    %163 = vector.broadcast %cst_70 : f32 to vector<8x64xf32>
    %164 = arith.addf %163, %162 : vector<8x64xf32>
    %165 = arith.mulf %139, %164 : vector<8x64xf32>
    %cst_71 = arith.constant -1.26551223 : f32
    %166 = vector.broadcast %cst_71 : f32 to vector<8x64xf32>
    %167 = arith.addf %166, %165 : vector<8x64xf32>
    %cst_72 = arith.constant 0.000000e+00 : f32
    %168 = vector.broadcast %cst_72 : f32 to vector<8x64xf32>
    %169 = arith.subf %168, %133 : vector<8x64xf32>
    %170 = arith.mulf %169, %133 : vector<8x64xf32>
    %171 = arith.addf %170, %167 : vector<8x64xf32>
    %172 = math.exp %171 : vector<8x64xf32>
    %173 = arith.mulf %139, %172 : vector<8x64xf32>
    %cst_73 = arith.constant 0.000000e+00 : f32
    %174 = vector.broadcast %cst_73 : f32 to vector<8x64xf32>
    %175 = arith.cmpf oge, %132, %174 : vector<8x64xf32>
    %cst_74 = arith.constant 1.000000e+00 : f32
    %176 = vector.broadcast %cst_74 : f32 to vector<8x64xf32>
    %177 = arith.subf %176, %173 : vector<8x64xf32>
    %cst_75 = arith.constant 1.000000e+00 : f32
    %178 = vector.broadcast %cst_75 : f32 to vector<8x64xf32>
    %179 = arith.subf %173, %178 : vector<8x64xf32>
    %180 = arith.select %175, %177, %179 : vector<8x64xi1>, vector<8x64xf32>
    %cst_76 = arith.constant 1.000000e+00 : f32
    %181 = vector.broadcast %cst_76 : f32 to vector<8x64xf32>
    %182 = arith.addf %181, %180 : vector<8x64xf32>
    %183 = arith.mulf %130, %182 : vector<8x64xf32>
    %184 = arith.truncf %183 : vector<8x64xf32> to vector<8x64xbf16>
    %cst_77 = arith.constant dense<0.000000e+00> : vector<8x32xf32>
    %185 = tpu.matmul %184, %5, %cst_77 {dimension_numbers = #tpu.dot_dimension_numbers<[1], [0], [0], [1], [0, 0, 1, 1], [], []>} : vector<8x64xbf16>, vector<64x32xbf16>, vector<8x32xf32> -> vector<8x32xf32>
    %186 = vector.broadcast %7 : vector<1x32xf32> to vector<8x32xf32>
    %187 = arith.addf %185, %186 : vector<8x32xf32>
    %188 = arith.addf %187, %124 : vector<8x32xf32>
    %cst_78 = arith.constant dense<0.000000e+00> : vector<8xf32>
    %189 = vector.multi_reduction <add>, %188, %cst_78 [1] : vector<8x32xf32> to vector<8xf32>
    %190 = vector.shape_cast %189 : vector<8xf32> to vector<8x1xf32>
    %cst_79 = arith.constant 3.200000e+01 : f32
    %191 = vector.broadcast %cst_79 : f32 to vector<8x1xf32>
    %192 = arith.divf %190, %191 : vector<8x1xf32>
    %193 = vector.broadcast %192 : vector<8x1xf32> to vector<8x32xf32>
    %194 = arith.subf %188, %193 : vector<8x32xf32>
    %195 = arith.mulf %194, %194 : vector<8x32xf32>
    %cst_80 = arith.constant dense<0.000000e+00> : vector<8xf32>
    %196 = vector.multi_reduction <add>, %195, %cst_80 [1] : vector<8x32xf32> to vector<8xf32>
    %197 = vector.shape_cast %196 : vector<8xf32> to vector<8x1xf32>
    %cst_81 = arith.constant 3.200000e+01 : f32
    %198 = vector.broadcast %cst_81 : f32 to vector<8x1xf32>
    %199 = arith.divf %197, %198 : vector<8x1xf32>
    %cst_82 = arith.constant 9.99999974E-6 : f32
    %200 = vector.broadcast %cst_82 : f32 to vector<8x1xf32>
    %201 = arith.addf %199, %200 : vector<8x1xf32>
    %202 = math.rsqrt %201 : vector<8x1xf32>
    %203 = vector.broadcast %202 : vector<8x1xf32> to vector<8x32xf32>
    %204 = arith.mulf %194, %203 : vector<8x32xf32>
    %205 = vector.broadcast %10 : vector<1x32xf32> to vector<8x32xf32>
    %206 = arith.mulf %204, %205 : vector<8x32xf32>
    %207 = vector.broadcast %11 : vector<1x32xf32> to vector<8x32xf32>
    %208 = arith.addf %206, %207 : vector<8x32xf32>
    %209 = vector.shape_cast %208 : vector<8x32xf32> to vector<1x8x32xf32>
    %c0_83 = arith.constant 0 : index
    %c0_84 = arith.constant 0 : index
    %c0_85 = arith.constant 0 : index
    %210 = vector.load %arg16[%c0_83, %c0_84, %c0_85] : memref<1x8x32xf32, #tpu.memory_space<vmem>>, vector<1x8x32xf32>
    tpu.vector_store %arg16[%c0_83, %c0_84, %c0_85], %209 {strides = array<i32>} : memref<1x8x32xf32, #tpu.memory_space<vmem>>, vector<1x8x32xf32>,
    return
  }
  func.func @transform_0(%arg0: i32) -> (i32, i32, i32) {
    %c0_i32 = arith.constant 0 : i32
    %c0_i32_0 = arith.constant 0 : i32
    %c0_i32_1 = arith.constant 0 : i32
    return %arg0, %c0_i32, %c0_i32_0 : i32, i32, i32
  }
  func.func @transform_1(%arg0: i32) -> (i32, i32, i32) {
    %c0_i32 = arith.constant 0 : i32
    %c0_i32_0 = arith.constant 0 : i32
    %c0_i32_1 = arith.constant 0 : i32
    return %arg0, %c0_i32, %c0_i32_0 : i32, i32, i32
  }
  func.func @transform_2(%arg0: i32) -> (i32, i32, i32) {
    %c0_i32 = arith.constant 0 : i32
    %c0_i32_0 = arith.constant 0 : i32
    %c0_i32_1 = arith.constant 0 : i32
    return %arg0, %c0_i32, %c0_i32_0 : i32, i32, i32
  }
  func.func @transform_3(%arg0: i32) -> (i32, i32) {
    %c0_i32 = arith.constant 0 : i32
    %c0_i32_0 = arith.constant 0 : i32
    %c0_i32_1 = arith.constant 0 : i32
    return %c0_i32, %c0_i32_0 : i32, i32
  }
  func.func @transform_4(%arg0: i32) -> (i32, i32) {
    %c0_i32 = arith.constant 0 : i32
    %c0_i32_0 = arith.constant 0 : i32
    %c0_i32_1 = arith.constant 0 : i32
    return %c0_i32, %c0_i32_0 : i32, i32
  }
  func.func @transform_5(%arg0: i32) -> (i32, i32) {
    %c0_i32 = arith.constant 0 : i32
    %c0_i32_0 = arith.constant 0 : i32
    %c0_i32_1 = arith.constant 0 : i32
    return %c0_i32, %c0_i32_0 : i32, i32
  }
  func.func @transform_6(%arg0: i32) -> (i32, i32) {
    %c0_i32 = arith.constant 0 : i32
    %c0_i32_0 = arith.constant 0 : i32
    %c0_i32_1 = arith.constant 0 : i32
    return %c0_i32, %c0_i32_0 : i32, i32
  }
  func.func @transform_7(%arg0: i32) -> (i32, i32) {
    %c0_i32 = arith.constant 0 : i32
    %c0_i32_0 = arith.constant 0 : i32
    %c0_i32_1 = arith.constant 0 : i32
    return %c0_i32, %c0_i32_0 : i32, i32
  }
  func.func @transform_8(%arg0: i32) -> (i32, i32) {
    %c0_i32 = arith.constant 0 : i32
    %c0_i32_0 = arith.constant 0 : i32
    %c0_i32_1 = arith.constant 0 : i32
    return %c0_i32, %c0_i32_0 : i32, i32
  }
  func.func @transform_9(%arg0: i32) -> (i32, i32) {
    %c0_i32 = arith.constant 0 : i32
    %c0_i32_0 = arith.constant 0 : i32
    %c0_i32_1 = arith.constant 0 : i32
    return %c0_i32, %c0_i32_0 : i32, i32
  }
  func.func @transform_10(%arg0: i32) -> (i32, i32) {
    %c0_i32 = arith.constant 0 : i32
    %c0_i32_0 = arith.constant 0 : i32
    %c0_i32_1 = arith.constant 0 : i32
    return %c0_i32, %c0_i32_0 : i32, i32
  }
  func.func @transform_11(%arg0: i32) -> (i32, i32) {
    %c0_i32 = arith.constant 0 : i32
    %c0_i32_0 = arith.constant 0 : i32
    %c0_i32_1 = arith.constant 0 : i32
    return %c0_i32, %c0_i32_0 : i32, i32
  }
  func.func @transform_12(%arg0: i32) -> (i32, i32) {
    %c0_i32 = arith.constant 0 : i32
    %c0_i32_0 = arith.constant 0 : i32
    %c0_i32_1 = arith.constant 0 : i32
    return %c0_i32, %c0_i32_0 : i32, i32
  }
  func.func @transform_13(%arg0: i32) -> (i32, i32) {
    %c0_i32 = arith.constant 0 : i32
    %c0_i32_0 = arith.constant 0 : i32
    %c0_i32_1 = arith.constant 0 : i32
    return %c0_i32, %c0_i32_0 : i32, i32
  }
  func.func @transform_14(%arg0: i32) -> (i32, i32) {
    %c0_i32 = arith.constant 0 : i32
    %c0_i32_0 = arith.constant 0 : i32
    %c0_i32_1 = arith.constant 0 : i32
    return %c0_i32, %c0_i32_0 : i32, i32
  }
  func.func @transform_15(%arg0: i32) -> (i32, i32, i32) {
    %c0_i32 = arith.constant 0 : i32
    %c0_i32_0 = arith.constant 0 : i32
    %c0_i32_1 = arith.constant 0 : i32
    return %arg0, %c0_i32, %c0_i32_0 : i32, i32, i32
  }
}

</mosaic_0001>

<bundles_post_ra>
// kernel: tpu_custom_call.1
= control target key start
LH: loop header
LB: loop body
LE: loop exit
PB: predicated region body
PF: predicated region fallthrough
CT: control target
= control target key end

     0   :  { %s2764_s0 = inlined_call_operand.vmem [shape: f32[2,8,32], index: 0, kind: input, shape index: {}]   ;;  %s2765_s1 = inlined_call_operand.vmem [shape: f32[2,8,32], index: 1, kind: input, shape index: {}]   ;;  %s2766_s2 = inlined_call_operand.hbm [shape: f32[2,1,8], index: 2, kind: input, shape index: {}]   ;;  %s2767_s3 = inlined_call_operand.vmem [shape: bf16[32,32], index: 3, kind: input, shape index: {}]   ;;  %s2768_s4 = inlined_call_operand.hbm [shape: bf16[32,32], index: 4, kind: input, shape index: {}]   ;;  %s2769_s5 = inlined_call_operand.hbm [shape: bf16[32,32], index: 5, kind: input, shape index: {}]   ;;  %s2770_s6 = inlined_call_operand.hbm [shape: bf16[32,32], index: 6, kind: input, shape index: {}]   ;;  %s2771_s7 = inlined_call_operand.hbm [shape: bf16[32,64], index: 7, kind: input, shape index: {}]   ;;  %s2772_s8 = inlined_call_operand.hbm [shape: f32[1,64], index: 8, kind: input, shape index: {}]   ;;  %s2773_s9 = inlined_call_operand.vmem [shape: bf16[64,32], index: 9, kind: input, shape index: {}]   ;;  %s2774_s10 = inlined_call_operand.vmem [shape: f32[1,32], index: 10, kind: input, shape index: {}]   ;;  %s2775_s11 = inlined_call_operand.vmem [shape: f32[1,32], index: 11, kind: input, shape index: {}]   ;;  %s2776_s12 = inlined_call_operand.vmem [shape: f32[1,32], index: 12, kind: input, shape index: {}]   ;;  %s2777_s13 = inlined_call_operand.vmem [shape: f32[1,32], index: 13, kind: input, shape index: {}]   ;;  %s2778_s14 = inlined_call_operand.vmem [shape: f32[1,32], index: 14, kind: input, shape index: {}]   ;;  %s2779_s15 = inlined_call_operand.hbm [shape: f32[2,8,32], index: 15, kind: output, shape index: {}]  }
   0x1   :  { %2788 = sst [smem:[#allocation22_spill]] %s2768_s4 }
   0x2   :  { %2789 = sst [smem:[#allocation23_spill]] %s2769_s5 }
   0x3   :  { %2790 = sst [smem:[#allocation24_spill]] %s2770_s6 }
   0x4   :  { %2791 = sst [smem:[#allocation25_spill]] %s2771_s7 }
   0x5   :  { %2792 = sst [smem:[#allocation26_spill]] %s2772_s8 }
   0x6   :  { %2793 = sst [smem:[#allocation27_spill]] %s2778_s14 }
   0x7   :  { %2794 = sst [smem:[#allocation28_spill]] %s2779_s15 }
   0x8   :  { %20 = vsyncpa [#allocation3], 0 }
   0x9   :  { %22 = vsyncpa [#allocation3 + $0x1], 0 }
   0xa   :  { %23 = vsyncpa [#allocation6], 0 }
   0xb   :  { %24 = vsyncpa [#allocation9], 0 }
   0xc   :  { %25 = vsyncpa [#allocation12], 0 }
   0xd   :  { %26 = vsyncpa [#allocation4], 0 }
   0xe   :  { %28 = vsyncpa [#allocation4 + $0x1], 0  ;;  %s2389_s18 = smov 0   ;;  %s2391_s19 = smov 0  }
   0xf   :  { %s2393_s20 = smov 0   ;;  %s2395_s21 = smov 0  }
  0x10 LB: > { %2795 = sst [smem:[#allocation19_spill]] %s2286_s20  ;;  %s2292_s22 = smov [#allocation5]   ;;  %s2290_s21 = sphi %s2395_s21, %s2823_s21   ;;  %s2286_s20 = sphi %s2393_s20, %s2825_s20   ;;  %s2282_s19 = sphi %s2391_s19, %s2827_s19   ;;  %s2278_s18 = sphi %s2389_s18, %s2826_s18  }
  0x11   : > { %s410_s23 = sshll.u32 %s2292_s22, 4  ;;  %s2410_s24 = sadd.s32 4294967295, %s2290_s21   ;;  %s411_s23 = int_to_ptr.vmem [resolvable:$true] %s410_s23 }
  0x12   : > { %p1718_p0 = scmp.ge.s32.totalorder %s2290_s21, 1  ;;  %p2781_p1 = scmp.eq.s32.totalorder %s2410_s24, 0 }
  0x13   : > { %p395_p2 = scmp.lt.s32.totalorder %s2290_s21, 3  ;;  %s2293_s26 = smov [#allocation8]  }
  0x14   : > { %s436_s27 = sshll.u32 %s2293_s26, 4  ;;  %s2294_s29 = smov [#allocation7]   ;;  %s2428_s27 = int_to_ptr.vmem [resolvable:$true] %s436_s27 }
  0x15   : > { %p2415_p3 = pnand %p1718_p0, %p395_p2  ;;  %s423_s30 = sshll.u32 %s2294_s29, 4  ;;  %s2430_s30 = int_to_ptr.vmem [resolvable:$true] %s423_s30 }
  0x16   : > { %s2067_s17 = scalar_lea.vmem %s411_s23, 256  ;;  %p2075_p11 = scmp.lt.s32.totalorder %s411_s23, %s411_s23 }
  0x17   : > { %s2796_s25 = scalar_select %p2415_p3, 1, 0 }
  0x18   : > { %p1935_p5 = pneg %p2415_p3  ;;  %p2068_p8 = scmp.ne.s32.totalorder %s411_s23, %s2067_s17 }
  0x19   : > { %p2076_p12 = scmp.lt.s32.totalorder %s2067_s17, %s2067_s17 }
  0x1a   : > { %p2424_p6 = pnand %p1935_p5, %p2781_p1 }
  0x1b   : > { %p2077_p13 = por %p2076_p12, %p2075_p11 }
  0x1c   : > { %p2434_p7 = pneg %p2424_p6 }
  0x1e   : > { %p2070_p9 = pnand %p2068_p8, %p2434_p7 }
  0x20   : > { %p2071_p10 = pneg %p2070_p9 }
  0x22   : > { %p2078_p0 = pnand %p2077_p13, %p2071_p10 }
  0x24   : > { %2081 = shalt.err (!%p2078_p0)
}
  0x25   : > { %s2295_s22 = smov 64   ;;  %s2296_s26 = smov 4  }
  0x26   : > { %s2799_s4 = sld [smem:[#allocation22_spill]]  ;;  %s2093_s14 = scalar_lea.vmem %s2428_s27, 256 }
  0x27   : > { %p2094_p2 = scmp.ne.s32.totalorder %s2428_s27, %s2093_s14  ;;  %p2101_p9 = scmp.lt.s32.totalorder %s2428_s27, %s2428_s27 }
  0x28   : > { %p2102_p10 = scmp.lt.s32.totalorder %s2093_s14, %s2093_s14 }
  0x29   : > { %p2096_p5 = pnand %p2094_p2, %p2434_p7 }
  0x2a   : > { %p2103_p11 = por %p2102_p10, %p2101_p9 }
  0x2b   : > { %p2097_p8 = pneg %p2096_p5 }
  0x2c   : > { %1938 = dma.hbm_to_vmem [thread:$0]  (!%p2424_p6), %s2799_s4, 256, %s411_s23, [#allocation6], %s2295_s22, %s2295_s22, %s2296_s26  }
  0x2d   : > { %p2104_p12 = pnand %p2103_p11, %p2097_p8 }
  0x2f   : > { %2107 = shalt.err (!%p2104_p12)
}
  0x30   : > { %s2800_s6 = sld [smem:[#allocation24_spill]]  ;;  %s2119_s23 = scalar_lea.vmem %s2430_s30, 256 }
  0x31   : > { %p2120_p13 = scmp.ne.s32.totalorder %s2430_s30, %s2119_s23  ;;  %p2127_p5 = scmp.lt.s32.totalorder %s2430_s30, %s2430_s30 }
  0x32   : > { %p2128_p8 = scmp.lt.s32.totalorder %s2119_s23, %s2119_s23 }
  0x33   : > { %p2122_p0 = pnand %p2120_p13, %p2434_p7 }
  0x34   : > { %p2129_p9 = por %p2128_p8, %p2127_p5 }
  0x35   : > { %p2123_p2 = pneg %p2122_p0 }
  0x36   : > { %1944 = dma.hbm_to_vmem [thread:$0]  (!%p2424_p6), %s2800_s6, 256, %s2428_s27, [#allocation9], %s2295_s22, %s2295_s22, %s2296_s26  }
  0x37   : > { %p2130_p10 = pnand %p2129_p9, %p2123_p2 }
  0x39   : > { %2133 = shalt.err (!%p2130_p10)
}
  0x3a   : > { %s2801_s5 = sld [smem:[#allocation23_spill]]  ;;  %s2297_s27 = smov [#allocation10]  }
  0x3b   : > { %s449_s17 = sshll.u32 %s2297_s27, 4  ;;  %s2298_s15 = smov [#allocation11]   ;;  %s450_s17 = int_to_ptr.vmem [resolvable:$true] %s449_s17 }
  0x3c   : > { %s463_s4 = sshll.u32 %s2298_s15, 4  ;;  %s2145_s23 = scalar_lea.vmem %s450_s17, 256  ;;  %s464_s4 = int_to_ptr.vmem [resolvable:$true] %s463_s4 }
  0x3d   : > { %p2146_p11 = scmp.ne.s32.totalorder %s450_s17, %s2145_s23  ;;  %p2153_p0 = scmp.lt.s32.totalorder %s450_s17, %s450_s17 }
  0x3e   : > { %p2154_p2 = scmp.lt.s32.totalorder %s2145_s23, %s2145_s23 }
  0x3f   : > { %p2148_p12 = pnand %p2146_p11, %p2434_p7 }
  0x40   : > { %1941 = dma.hbm_to_vmem [thread:$0]  (!%p2424_p6), %s2801_s5, 256, %s2430_s30, [#allocation6], %s2295_s22, %s2295_s22, %s2296_s26  }
  0x41   : > { %p2149_p13 = pneg %p2148_p12  ;;  %p2155_p5 = por %p2154_p2, %p2153_p0 }
  0x43   : > { %p2156_p8 = pnand %p2155_p5, %p2149_p13 }
  0x45   : > { %2159 = shalt.err (!%p2156_p8)
}
  0x46   : > { %s2802_s7 = sld [smem:[#allocation25_spill]]  ;;  %s2171_s29 = scalar_lea.vmem %s464_s4, 16 }
  0x47   : > { %p2172_p9 = scmp.ne.s32.totalorder %s464_s4, %s2171_s29  ;;  %s2178_s27 = scalar_lea.vmem %s464_s4, 32 }
  0x48   : > { %p2179_p12 = scmp.lt.s32.totalorder %s464_s4, %s464_s4  ;;  %p2180_p13 = scmp.lt.s32.totalorder %s2178_s27, %s2171_s29 }
  0x49   : > { %p2174_p10 = pnand %p2172_p9, %p2434_p7 }
  0x4a   : > { %p2181_p0 = por %p2180_p13, %p2179_p12 }
  0x4b   : > { %p2175_p11 = pneg %p2174_p10 }
  0x4c   : > { %1947 = dma.hbm_to_vmem [thread:$0]  (!%p2424_p6), %s2802_s7, 256, %s450_s17, [#allocation9], %s2295_s22, %s2295_s22, %s2296_s26  }
  0x4d   : > { %p2182_p2 = pnand %p2181_p0, %p2175_p11 }
  0x4f   : > { %2185 = shalt.err (!%p2182_p2)
}
  0x50   : > { %s2803_s8 = sld [smem:[#allocation26_spill]]  ;;  %s1717_s16 = sadd.s32 4294967294, %s2290_s21  }
  0x51   : > { %s2497_s28 = sadd.s32 1, %s2290_s21   ;;  %s93_s22 = sadd.s32 1, %s2286_s20 }
  0x52   : > { %2804 = sst [smem:[#allocation20_spill]] %s2497_s28  ;;  %s90_s26 = ssub.s32 %s2290_s21, %s2497_s28 }
  0x53   : > { %p100_p7 = scmp.ne.s32.totalorder %s2286_s20, %s2282_s19  ;;  %p91_p5 = scmp.eq.s32.totalorder %s90_s26, 0 }
  0x54   : > { %p101_p8 = scmp.eq.s32.totalorder %s2290_s21, 0  ;;  %p106_p9 = scmp.ne.s32.totalorder %s2282_s19, %s2278_s18 }
  0x55   : > { %p382_p10 = scmp.eq.s32.totalorder %s2410_s24, 1  ;;  %p388_p13 = scmp.eq.s32.totalorder %s1717_s16, 1 }
  0x56   : > { %1950 = dma.hbm_to_vmem [thread:$0]  (!%p2424_p6), %s2803_s8, 16, %s464_s4, [#allocation12]  }
  0x57   : > { %s2509_s17 = scalar_select %p91_p5, %s2286_s20, %s93_s22  }
  0x58   : > { %p102_p11 = por %p101_p8, %p100_p7  ;;  %p2513_p12 = por %p2781_p1, %p106_p9 }
  0x59   : > { %2805 = sst [smem:[#allocation21_spill]] %s2509_s17  ;;  %p2517_p6 = por %p382_p10, %p100_p7 }
  0x5a   : > { %s2806_s30 = scalar_select %p2513_p12, 1, 0 }
  0x5b   : > { %s2807_s4 = scalar_select %p2517_p6, 1, 0 }
  0x5c   : > { %p1964_p0 = scmp.lt.s32.totalorder %s2290_s21, 2  ;;  %s506_s14 = sand.u32 1, %s2286_s20  }
  0x5d   : > { %p2523_p2 = por %p388_p13, %p106_p9  ;;  %s1725_s27 = sshll.u32 %s2290_s21, 4 }
  0x5e   : > { %s2531_s22 = scalar_lea.hbm %s2766_s2, %s1725_s27  ;;  %s509_s26 = scalar_lea.vmem [#allocation2], %s506_s14 }
  0x5f   : > { %s2808_s29 = scalar_select %p2523_p2, 1, 0 }
  0x60   : > { %s516_s5 = sshll.u32 %s509_s26, 4  ;;  %p2533_p7 = pnand %p1964_p0, %p102_p11  ;;  %s517_s5 = int_to_ptr.vmem [resolvable:$true] %s516_s5 }
  0x61   : > { %s507_s6 = scalar_lea.sflag [#allocation3], %s506_s14  ;;  %s2186_s7 = scalar_lea.hbm %s2531_s22, 16 }
  0x62   : > { %p2187_p5 = scmp.ne.s32.totalorder %s2531_s22, %s2186_s7  ;;  %p2188_p8 = pneg %p2533_p7 }
  0x63   : > { %s2191_s23 = scalar_lea.hbm %s2766_s2, 32  ;;  %p2192_p13 = scmp.lt.s32.totalorder %s2531_s22, %s2766_s2 }
  0x64   : > { %p2189_p9 = pnand %p2188_p8, %p2187_p5  ;;  %p2193_p11 = scmp.lt.s32.totalorder %s2191_s23, %s2186_s7 }
  0x66   : > { %p2190_p10 = pneg %p2189_p9  ;;  %p2194_p0 = por %p2193_p11, %p2192_p13 }
  0x68   : > { %p2195_p4 = pnand %p2194_p0, %p2190_p10 }
  0x6a   : > { %2198 = shalt.err (!%p2195_p4)
}
  0x6b   : > { %s2199_s26 = scalar_lea.vmem %s517_s5, 16  ;;  %s2299_s14 = smov [#allocation2]  }
  0x6c   : > { %p2200_p1 = scmp.ne.s32.totalorder %s517_s5, %s2199_s26  ;;  %s2204_s20 = sshll.u32 %s2299_s14, 4  ;;  %s2205_s20 = int_to_ptr.vmem [resolvable:$false] %s2204_s20 }
  0x6d   : > { %s2206_s28 = scalar_lea.vmem %s2205_s20, 32  ;;  %p2207_p5 = scmp.lt.s32.totalorder %s517_s5, %s2205_s20 }
  0x6e   : > { %p2202_p2 = pnand %p2200_p1, %p2188_p8  ;;  %p2208_p9 = scmp.lt.s32.totalorder %s2206_s28, %s2199_s26 }
  0x70   : > { %p2203_p6 = pneg %p2202_p2  ;;  %p2209_p12 = por %p2208_p9, %p2207_p5 }
  0x72   : > { %p2210_p3 = pnand %p2209_p12, %p2203_p6 }
  0x74   : > { %2213 = shalt.err (!%p2210_p3)
}
  0x75   : > { %1954 = dma.hbm_to_vmem [thread:$0]  (!%p2533_p7), %s2531_s22, 16, %s517_s5, %s507_s6  }
  0x76   : > { %p2810_p10 = scmp.ne.s32.totalorder %s2796_s25, 0 }
  0x77   : > { %s2554_s7 = sand.u32 (!%p2810_p10), 1, %s2282_s19   ;;  %p2811_p1 = scmp.ne.s32.totalorder (!%p2810_p10), %s2806_s30, 0 }
  0x78   : > { %525 = sbr.rel (%p2810_p10) target bundleno = 2606 (0xa2e), region = 80  ;;  %s528_s8 = scalar_lea.sflag (!%p2810_p10), [#allocation3], %s2554_s7 }
  0x79   : > { %s530_s17 = scalar_lea.vmem (!%p2810_p10), [#allocation2], %s2554_s7 }
  0x7d   : > { %2257 = dma.done.wait (%p2811_p1), %s528_s8, 16  }
  0x7e   : > { %2259 = vsyncadd (%p2811_p1), %s528_s8, 4294967280  ;;  %p2812_p3 = scmp.eq.s32.totalorder %s2410_s24, 0 }
  0x80   : > { %2261 = dma.done.wait (%p2812_p3), [#allocation6], 512   ;;  %p2813_p4 = pmov %p2812_p3 }
  0x81   : > { %p2814_p12 = pmov %p2812_p3 }
  0x82   : > { %2263 = vsyncadd (%p2813_p4), [#allocation6], 4294966784 }
  0x83   : > { %2265 = dma.done.wait (%p2814_p12), [#allocation9], 512   ;;  %p2815_p6 = pmov %p2812_p3 }
  0x84   : > { %p2816_p2 = pmov %p2812_p3 }
  0x85   : > { %2267 = vsyncadd (%p2815_p6), [#allocation9], 4294966784 }
  0x86   : > { %2269 = dma.done.wait (%p2816_p2), [#allocation12], 16   ;;  %p2817_p7 = pmov %p2816_p2 }
  0x87   : > { %p604_p8 = scmp.lt.s32.totalorder %s2410_s24, 1  ;;  %v2300_v0 = vmov 0.0   ;;  %vm2301_vm0 = vmmov 0   ;;  %v2018_v1 = vld [vmem:[#allocation5 + $0x8] sm:$0xff]   ;;  %v2020_v3 = vld [vmem:[#allocation5] sm:$0xff]   ;;  %vm661_vm1 = vcmask 261120  }
  0x88   : > { %2271 = vsyncadd (%p2817_p7), [#allocation12], 4294967280  ;;  %1819 = vmatprep.subr.bf16.mxu1 %v2300_v0  ;;  %1811 = vmatprep.subr.bf16.mxu0 %v2300_v0  ;;  %v2019_v2 = vld [vmem:[%s2767_s3 + $0x8] sm:$0xff]   ;;  %v2021_v4 = vld [vmem:[%s2767_s3] sm:$0xff]   ;;  %vm819_vm2 = vcmask 64512   ;;  %s2302_s15 = smov 112  }
  0x89   : > { %1823 = vmatprep.mubr.msk.bf16.mxu1 %vm2301_vm0, %v2300_v0  ;;  %s2580_s5 = scalar_select %p604_p8, %s2410_s24, 1  ;;  %1815 = vmatprep.mubr.msk.bf16.mxu0 %vm2301_vm0, %v2300_v0  ;;  %v2022_v18 = vld [vmem:[#allocation7 + $0x8] sm:$0xff]   ;;  %v2023_v19 = vld [vmem:[#allocation7] sm:$0xff]   ;;  %vm881_vm3 = vcmask 1043456   ;;  %vm1271_vm4 = vcmask 130048   ;;  %vm1273_vm5 = vcmask 195584  }
  0x8a   : > { %1820 = vmatpush3.bf16.msra.mxu1 %v2018_v1  ;;  %1812 = vmatpush3.bf16.msra.mxu0 %v2019_v2  ;;  %s2303_s23 = smov 120   ;;  %s2304_s26 = smov 104   ;;  %v1744_v29 = vld [vmem:[%s530_s17] ss:$0 sm:$0xff]  ;;  %vm1491_vm7 = vcmask 523264  }
  0x8b   : > { %s1733_s6 = sshll.u32 %s2580_s5, 3  ;;  %1821 = vmatprep.subr.bf16.mxu1 %v2300_v0  ;;  %1813 = vmatprep.subr.bf16.mxu0 %v2300_v0  ;;  %s2305_s14 = smov 8  }
  0x8c   : > { %s607_s22 = scalar_lea.vmem %s2764_s0, %s1733_s6  ;;  %s2306_s8 = smov 16  }
  0x8d   : > { %v2598_v5 = vld [vmem:[%s607_s22] sm:$0xff]  ;;  %s2307_s17 = smov 24   ;;  %s611_s28 = scalar_lea.vmem %s2765_s1, %s1733_s6 }
  0x8e   : > { %v648_v6 = vpack.c.bf16 %v2598_v5, %v2598_v5  ;;  %1822 = vmatpush3.bf16.msra.mxu1 %v2020_v3  ;;  %1814 = vmatpush3.bf16.msra.mxu0 %v2021_v4  ;;  %s2818_s16 = sld [smem:[#allocation27_spill]]  ;;  %s1772_s27 = sshll.u32 %s2410_s24, 7 }
  0x8f   : > { %1835 = vmatprep.subr.bf16.mxu1 %v2300_v0  ;;  %1827 = vmatprep.subr.bf16.mxu0 %v2300_v0  ;;  %s1565_s20 = scalar_lea.sflag [#allocation4], %s2554_s7  ;;  %p2820_p11 = scmp.ne.s32.totalorder %s2807_s4, 0 }
  0x90   : > { %s2308_s5 = smov [#allocation13]  }
  0x91   : > { %1824 = vmatmul.mubr.msk.bf16.vlgmr.msra.gmra.mxu1 %vm661_vm1, %v648_v6  ;;  %1816 = vmatmul.mubr.msk.bf16.vlgmr.msra.gmra.mxu0 %vm661_vm1, %v648_v6  ;;  %s2218_s6 = sshll.u32 %s2308_s5, 4  ;;  %s2219_s6 = int_to_ptr.vmem [resolvable:$false] %s2218_s6 }
  0x92   : > { %1837 = vmatprep.mubr.msk.bf16.mxu1 %vm2301_vm0, %v2300_v0  ;;  %1831 = vmatprep.mubr.msk.bf16.mxu0 %vm2301_vm0, %v2300_v0  ;;  %s2220_s24 = scalar_lea.vmem %s2219_s6, 256 }
  0x93   : > { %1828 = vmatpush3.bf16.msra.mxu0 %v2022_v18 }
  0x94   : > { %1829 = vmatprep.subr.bf16.mxu0 %v2300_v0 }
  0x97   : > { %1830 = vmatpush3.bf16.msra.mxu0 %v2023_v19 }
  0x98   : > { %1841 = vmatprep.subr.bf16.mxu0 %v2300_v0 }
  0x9a   : > { %1832 = vmatmul.mubr.msk.bf16.vlgmr.msra.gmra.mxu0 %vm661_vm1, %v648_v6 }
  0x9b   : > { %1843 = vmatprep.mubr.msk.bf16.mxu0 %vm2301_vm0, %v2300_v0 }
 0x151   : > { %v751_v7 = vpop.f32.mrf.mxu1  ;;  %v699_v9 = vpop.f32.mrf.mxu0 }
 0x152   : > { %v810_v8 = vpack.c.bf16 %v751_v7, %v751_v7  ;;  %v809_v11 = vpack.c.bf16 %v699_v9, %v699_v9 }
 0x153   : > { %v1825_v10 = vpop.f32.mrf.mxu1  ;;  %v1817_v12 = vpop.f32.mrf.mxu0 }
 0x154   : > { %1040 = vrot.lane.b32.xlu1 %v810_v8, %s2302_s15  ;;  %929 = vrot.lane.b32.xlu0 %v810_v8, %s2303_s23  ;;  %v824_v13 = vsel %vm819_vm2, %v810_v8, 0 }
 0x155   : > { %v754_v14 = vpop.f32.mrf.mxu1  ;;  %1836 = vmatpush3.bf16.xpose.msra.mxu1 %v824_v13  ;;  %v702_v15 = vpop.f32.mrf.mxu0 }
 0x156   : > { %1847 = vmatprep.subr.bf16.mxu1 %v2300_v0 }
 0x157   : > { %v1826_v16 = vpop.f32.mrf.mxu1  ;;  %v1818_v17 = vpop.f32.mrf.mxu0 }
 0x158   : > { %1038 = vrot.lane.b32.xlu1 %v809_v11, %s2302_s15  ;;  %926 = vrot.lane.b32.xlu0 %v809_v11, %s2303_s23 }
 0x15a   : > { %v803_v36 = vpop.f32.mrf.mxu0 }
 0x15b   : > { %v811_v37 = vpack.c.bf16 %v803_v36, %v803_v36 }
 0x15c   : > { %1148 = vrot.lane.b32.xlu1 %v809_v11, %s2304_s26  ;;  %1150 = vrot.lane.b32.xlu0 %v810_v8, %s2304_s26  ;;  %v1833_v38 = vpop.f32.mrf.mxu0 }
 0x15d   : > { %1838 = vmatmul.mubr.msk.bf16.vlgmr.msra.gmra.mxu1 %vm819_vm2, %v809_v11  ;;  %v883_v39 = vsel %vm881_vm3, %v811_v37, 0 }
 0x15e   : > { %1849 = vmatprep.mubr.msk.bf16.mxu1 %vm2301_vm0, %v2300_v0  ;;  %v806_v40 = vpop.f32.mrf.mxu0  ;;  %1842 = vmatpush3.bf16.msra.mxu0 %v883_v39 }
 0x15f   : > { %1853 = vmatprep.subr.bf16.mxu0 %v2300_v0 }
 0x160   : > { %v1834_v41 = vpop.f32.mrf.mxu0 }
 0x1c6   : > { %v930_v20 = vpop.permute.xlu0 %929  ;;  %v1041_v22 = vpop.permute.xlu1 %1040 }
 0x1c7   : > { %v935_v21 = vsel %vm819_vm2, %v930_v20, 0  ;;  %v1046_v24 = vsel %vm819_vm2, %v1041_v22, 0 }
 0x1c8   : > { %1848 = vmatpush3.bf16.xpose.msra.mxu1 %v935_v21 }
 0x1c9   : > { %1859 = vmatprep.subr.bf16.mxu1 %v2300_v0 }
 0x1ca   : > { %v927_v23 = vpop.permute.xlu0 %926  ;;  %v1039_v26 = vpop.permute.xlu1 %1038 }
 0x1ce   : > { %v1151_v25 = vpop.permute.xlu0 %1150  ;;  %v1149_v28 = vpop.permute.xlu1 %1148 }
 0x1cf   : > { %1850 = vmatmul.mubr.msk.bf16.vlgmr.msra.gmra.mxu1 %vm819_vm2, %v927_v23  ;;  %v1156_v27 = vsel %vm819_vm2, %v1151_v25, 0 }
 0x1d0   : > { %1860 = vmatpush3.bf16.xpose.msra.mxu1 %v1046_v24  ;;  %1861 = vmatprep.mubr.msk.bf16.mxu1 %vm2301_vm0, %v2300_v0 }
 0x1d1   : > { %1871 = vmatprep.subr.bf16.mxu1 %v2300_v0 }
 0x1d7   : > { %1862 = vmatmul.mubr.msk.bf16.vlgmr.msra.gmra.mxu1 %vm819_vm2, %v1039_v26 }
 0x1d8   : > { %1872 = vmatpush3.bf16.xpose.msra.mxu1 %v1156_v27  ;;  %1873 = vmatprep.mubr.msk.bf16.mxu1 %vm2301_vm0, %v2300_v0 }
 0x1d9   : > { %1883 = vmatprep.subr.bf16.mxu1 %v2300_v0 }
 0x1df   : > { %1874 = vmatmul.mubr.msk.bf16.vlgmr.msra.gmra.mxu1 %vm819_vm2, %v1149_v28 }
 0x1e0   : > { %1887 = vmatprep.mubr.msk.bf16.mxu1 %vm2301_vm0, %v2300_v0 }
 0x21d   : > { %v860_v30 = vpop.f32.mrf.mxu1 }
 0x21e   : > { %v861_v31 = vadd.f32 %v1744_v29, %v860_v30 }
 0x21f   : > { %v1839_v32 = vpop.f32.mrf.mxu1 }
 0x220   : > { %v866_v33 = vsel %vm819_vm2, %v861_v31, -inf }
 0x221   : > { %867 = vmax.xlane.f32.xlu0 %v866_v33  ;;  %v863_v34 = vpop.f32.mrf.mxu1 }
 0x223   : > { %v1840_v35 = vpop.f32.mrf.mxu1 }
 0x28f   : > { %v971_v42 = vpop.f32.mrf.mxu1 }
 0x290   : > { %v972_v43 = vadd.f32 %v1744_v29, %v971_v42 }
 0x291   : > { %v1851_v44 = vpop.f32.mrf.mxu1 }
 0x292   : > { %v977_v45 = vsel %vm819_vm2, %v972_v43, -inf  ;;  %v2024_v44 = vld [vmem:[#allocation8 + $0x8] sm:$0xff]  }
 0x293   : > { %978 = vmax.xlane.f32.xlu1 %v977_v45  ;;  %v974_v46 = vpop.f32.mrf.mxu1  ;;  %1884 = vmatpush3.bf16.msra.mxu1 %v2024_v44 }
 0x294   : > { %1885 = vmatprep.subr.bf16.mxu1 %v2300_v0 }
 0x295   : > { %v1852_v47 = vpop.f32.mrf.mxu1 }
 0x296   : > { %v2025_v47 = vld [vmem:[#allocation8] sm:$0xff]  }
 0x297   : > { %v1082_v48 = vpop.f32.mrf.mxu1  ;;  %1886 = vmatpush3.bf16.msra.mxu1 %v2025_v47 }
 0x298   : > { %v1083_v49 = vadd.f32 %v1744_v29, %v1082_v48  ;;  %1899 = vmatprep.subr.bf16.mxu1 %v2300_v0 }
 0x299   : > { %v1863_v50 = vpop.f32.mrf.mxu1 }
 0x29a   : > { %v1088_v51 = vsel %vm819_vm2, %v1083_v49, -inf }
 0x29b   : > { %1089 = vmax.xlane.f32.xlu0 %v1088_v51  ;;  %v1085_v52 = vpop.f32.mrf.mxu1 }
 0x29d   : > { %v1864_v53 = vpop.f32.mrf.mxu1 }
 0x29f   : > { %v1192_v54 = vpop.f32.mrf.mxu1 }
 0x2a0   : > { %v1193_v55 = vadd.f32 %v1744_v29, %v1192_v54 }
 0x2a1   : > { %v1875_v56 = vpop.f32.mrf.mxu1 }
 0x2a2   : > { %v1198_v57 = vsel %vm819_vm2, %v1193_v55, -inf }
 0x2a3   : > { %1199 = vmax.xlane.f32.xlu0 %v1198_v57  ;;  %v1195_v58 = vpop.f32.mrf.mxu1 }
 0x2a5   : > { %v1876_v59 = vpop.f32.mrf.mxu1 }
 0x2aa   : > { %v868_v60 = vpop.xlane.xlu0 %867 }
 0x2ab   : > { %v869_v61 = vsub.f32 %v861_v31, %v868_v60 }
 0x2ad   : > { %v870_v62 = vmul.f32 1.442695, %v869_v61 }
 0x2af   : > { %2032 = vpow2.f32 %v870_v62 }
 0x2bc   : > { %v2033_v63 = vpop.eup %2032 }
 0x2bd   : > { %v872_v1 = vsel %vm819_vm2, %v2033_v63, 0.0 }
 0x2be   : > { %873 = vadd.xlane.f32.xlu1 %v872_v1 }
 0x2cf   : > { %990 = vrot.lane.b32.xlu1 %v811_v37, %s2303_s23 }
 0x31c   : > { %v979_v2 = vpop.xlane.xlu1 %978 }
 0x31d   : > { %v980_v3 = vsub.f32 %v972_v43, %v979_v2  ;;  %v1276_v2 = vld [vmem:[%s611_s28] sm:$0xff]  ;;  %s1732_s28 = sshll.u32 %s2554_s7, 3 }
 0x31f   : > { %v981_v4 = vmul.f32 1.442695, %v980_v3 }
 0x321   : > { %2034 = vpow2.f32 %v981_v4 }
 0x324   : > { %v1090_v6 = vpop.xlane.xlu0 %1089 }
 0x325   : > { %v1091_v7 = vsub.f32 %v1083_v49, %v1090_v6 }
 0x327   : > { %v1092_v8 = vmul.f32 1.442695, %v1091_v7 }
 0x329   : > { %2036 = vpow2.f32 %v1092_v8 }
 0x32c   : > { %v1200_v9 = vpop.xlane.xlu0 %1199 }
 0x32d   : > { %v1201_v10 = vsub.f32 %v1193_v55, %v1200_v9 }
 0x32e   : > { %v2035_v11 = vpop.eup %2034 }
 0x32f   : > { %v1202_v12 = vmul.f32 1.442695, %v1201_v10  ;;  %v983_v13 = vsel %vm819_vm2, %v2035_v11, 0.0 }
 0x330   : > { %984 = vadd.xlane.f32.xlu0 %v983_v13 }
 0x331   : > { %2038 = vpow2.f32 %v1202_v12 }
 0x336   : > { %v2037_v14 = vpop.eup %2036 }
 0x337   : > { %v1094_v15 = vsel %vm819_vm2, %v2037_v14, 0.0 }
 0x338   : > { %1095 = vadd.xlane.f32.xlu1 %v1094_v15 }
 0x33e   : > { %v2039_v16 = vpop.eup %2038 }
 0x33f   : > { %v1204_v17 = vsel %vm819_vm2, %v2039_v16, 0.0 }
 0x340   : > { %1205 = vadd.xlane.f32.xlu0 %v1204_v17  ;;  %v2027_v17 = vld [vmem:[#allocation10] sm:$0xff]  }
 0x347   : > { %v874_v18 = vpop.xlane.xlu1 %873 }
 0x348   : > { %2040 = vrcp.f32 %v874_v18 }
 0x349   : > { %1210 = vrot.lane.b32.xlu1 %v811_v37, %s2304_s26 }
 0x34b   : > { %v991_v20 = vpop.permute.xlu1 %990 }
 0x34c   : > { %v996_v23 = vsel %vm881_vm3, %v991_v20, 0 }
 0x355   : > { %v2041_v19 = vpop.eup %2040 }
 0x356   : > { %1100 = vrot.lane.b32.xlu0 %v811_v37, %s2302_s15  ;;  %v876_v21 = vmul.f32 %v2041_v19, %v2033_v63  ;;  %s603_s15 = scalar_lea.vmem [#allocation13], %s1732_s28 }
 0x357   : > { %s1578_s23 = sshll.u32 %s603_s15, 4  ;;  %s1579_s23 = int_to_ptr.vmem [resolvable:$true] %s1578_s23 }
 0x358   : > { %v877_v22 = vpack.c.bf16 %v876_v21, %v876_v21  ;;  %v1756_v21 = vld [vmem:[%s2775_s11] ss:$0 sm:$0xff]  ;;  %s2214_s25 = scalar_lea.vmem %s1579_s23, 128  ;;  %p2221_p9 = scmp.lt.s32.totalorder %s1579_s23, %s2219_s6 }
 0x359   : > { %p2215_p13 = scmp.ne.s32.totalorder %s1579_s23, %s2214_s25  ;;  %p2222_p10 = scmp.lt.s32.totalorder %s2220_s24, %s2214_s25 }
 0x35a   : > { %1844 = vmatmul.mubr.msk.bf16.vlgmr.msra.gmra.mxu0 %vm819_vm2, %v877_v22 }
 0x35b   : > { %1854 = vmatpush3.bf16.msra.mxu0 %v996_v23  ;;  %1855 = vmatprep.mubr.msk.bf16.mxu0 %vm2301_vm0, %v2300_v0  ;;  %v1757_v23 = vld [vmem:[%s2776_s12] ss:$0 sm:$0xff]  ;;  %p2216_p0 = pnand %p2215_p13, %p2820_p11  ;;  %p2223_p1 = por %p2222_p10, %p2221_p9 }
 0x35c   : > { %1865 = vmatprep.subr.bf16.mxu0 %v2300_v0 }
 0x35d   : > { %p2217_p5 = pneg %p2216_p0 }
 0x35f   : > { %p2224_p3 = pnand %p2223_p1, %p2217_p5 }
 0x3b9   : > { %v985_v24 = vpop.xlane.xlu0 %984 }
 0x3ba   : > { %2042 = vrcp.f32 %v985_v24 }
 0x3c1   : > { %v1096_v25 = vpop.xlane.xlu1 %1095 }
 0x3c2   : > { %2044 = vrcp.f32 %v1096_v25 }
 0x3c5   : > { %v1211_v34 = vpop.permute.xlu1 %1210 }
 0x3c6   : > { %v1216_v36 = vsel %vm881_vm3, %v1211_v34, 0 }
 0x3c7   : > { %v2043_v26 = vpop.eup %2042 }
 0x3c8   : > { %v987_v27 = vmul.f32 %v2043_v26, %v2035_v11 }
 0x3c9   : > { %v1206_v28 = vpop.xlane.xlu0 %1205 }
 0x3ca   : > { %2046 = vrcp.f32 %v1206_v28  ;;  %v988_v29 = vpack.c.bf16 %v987_v27, %v987_v27  ;;  %v2028_v27 = vld [vmem:[%s2773_s9 + $0x18] sm:$0xff]   ;;  %v2029_v28 = vld [vmem:[%s2773_s9 + $0x10] sm:$0xff]  }
 0x3cc   : > { %1856 = vmatmul.mubr.msk.bf16.vlgmr.msra.gmra.mxu0 %vm819_vm2, %v988_v29  ;;  %v2030_v29 = vld [vmem:[%s2773_s9 + $0x8] sm:$0xff]  }
 0x3cd   : > { %v1101_v30 = vpop.permute.xlu0 %1100  ;;  %1867 = vmatprep.mubr.msk.bf16.mxu0 %vm2301_vm0, %v2300_v0 }
 0x3ce   : > { %v1106_v31 = vsel %vm881_vm3, %v1101_v30, 0  ;;  %v2031_v30 = vld [vmem:[%s2773_s9] sm:$0xff]  }
 0x3cf   : > { %v2045_v32 = vpop.eup %2044  ;;  %1866 = vmatpush3.bf16.msra.mxu0 %v1106_v31  ;;  %v1758_v31 = vld [vmem:[#allocation11] ss:$0 sm:$0xff] }
 0x3d0   : > { %1877 = vmatprep.subr.bf16.mxu0 %v2300_v0  ;;  %v1098_v33 = vmul.f32 %v2045_v32, %v2037_v14 }
 0x3d2   : > { %v1099_v35 = vpack.c.bf16 %v1098_v33, %v1098_v33 }
 0x3d4   : > { %1868 = vmatmul.mubr.msk.bf16.vlgmr.msra.gmra.mxu0 %vm819_vm2, %v1099_v35 }
 0x3d5   : > { %1878 = vmatpush3.bf16.msra.mxu0 %v1216_v36  ;;  %1879 = vmatprep.mubr.msk.bf16.mxu0 %vm2301_vm0, %v2300_v0 }
 0x3d6   : > { %1891 = vmatprep.subr.bf16.mxu0 %v2300_v0 }
 0x3d7   : > { %v2047_v37 = vpop.eup %2046 }
 0x3d8   : > { %v1208_v38 = vmul.f32 %v2047_v37, %v2039_v16  ;;  %v2026_v16 = vld [vmem:[#allocation10 + $0x8] sm:$0xff]  }
 0x3da   : > { %v1209_v39 = vpack.c.bf16 %v1208_v38, %v1208_v38 }
 0x3dc   : > { %1880 = vmatmul.mubr.msk.bf16.vlgmr.msra.gmra.mxu0 %vm819_vm2, %v1209_v39 }
 0x3dd   : > { %1895 = vmatprep.mubr.msk.bf16.mxu0 %vm2301_vm0, %v2300_v0  ;;  %1892 = vmatpush3.bf16.msra.mxu0 %v2026_v16 }
 0x3de   : > { %1893 = vmatprep.subr.bf16.mxu0 %v2300_v0 }
 0x3e1   : > { %1894 = vmatpush3.bf16.msra.mxu0 %v2027_v17 }
 0x41a   : > { %v919_v40 = vpop.f32.mrf.mxu0 }
 0x41c   : > { %v1845_v41 = vpop.f32.mrf.mxu0 }
 0x41e   : > { %v922_v42 = vpop.f32.mrf.mxu0 }
 0x420   : > { %v1846_v43 = vpop.f32.mrf.mxu0 }
 0x48c   : > { %v1032_v45 = vpop.f32.mrf.mxu0 }
 0x48d   : > { %1259 = vrot.lane.b32.xlu1 %v1032_v45, %s2305_s14 }
 0x48e   : > { %v1857_v46 = vpop.f32.mrf.mxu0 }
 0x490   : > { %v1035_v48 = vpop.f32.mrf.mxu0 }
 0x492   : > { %v1858_v49 = vpop.f32.mrf.mxu0 }
 0x494   : > { %v1142_v50 = vpop.f32.mrf.mxu0 }
 0x495   : > { %1263 = vrot.lane.b32.xlu0 %v1142_v50, %s2306_s8  ;;  %s2819_s8 = sld [smem:[#allocation28_spill]] }
 0x496   : > { %v1869_v51 = vpop.f32.mrf.mxu0 }
 0x498   : > { %v1145_v52 = vpop.f32.mrf.mxu0 }
 0x49a   : > { %v1870_v53 = vpop.f32.mrf.mxu0 }
 0x49c   : > { %v1252_v54 = vpop.f32.mrf.mxu0 }
 0x49d   : > { %1267 = vrot.lane.b32.xlu1 %v1252_v54, %s2307_s17  ;;  %s1576_s17 = scalar_lea.hbm %s2819_s8, %s1772_s27 }
 0x49e   : > { %v1881_v55 = vpop.f32.mrf.mxu0 }
 0x4a0   : > { %v1255_v56 = vpop.f32.mrf.mxu0 }
 0x4a2   : > { %v1882_v57 = vpop.f32.mrf.mxu0 }
 0x4ff   : > { %v1260_v58 = vpop.permute.xlu1 %1259 }
 0x500   : > { %v1270_v60 = vsel %vm819_vm2, %v919_v40, %v1260_v58 }
 0x507   : > { %v1264_v59 = vpop.permute.xlu0 %1263 }
 0x508   : > { %v1272_v61 = vsel %vm1271_vm4, %v1270_v60, %v1264_v59 }
 0x50f   : > { %v1268_v62 = vpop.permute.xlu1 %1267 }
 0x510   : > { %v1274_v63 = vsel %vm1273_vm5, %v1272_v61, %v1268_v62 }
 0x511   : > { %v1275_v1 = vpack.c.bf16 %v1274_v63, %v1274_v63 }
 0x513   : > { %1888 = vmatmul.mubr.msk.bf16.vlgmr.msra.gmra.mxu1 %vm661_vm1, %v1275_v1 }
 0x514   : > { %1907 = vmatprep.mubr.msk.bf16.mxu1 %vm2301_vm0, %v2300_v0  ;;  %1900 = vmatpush3.bf16.msra.mxu1 %v2028_v27 }
 0x515   : > { %1901 = vmatprep.subr.bf16.mxu1 %v2300_v0 }
 0x518   : > { %1902 = vmatpush3.bf16.msra.mxu1 %v2029_v28  ;;  %v1770_v28 = vld [vmem:[%s2818_s16] ss:$0 sm:$0xff] }
 0x519   : > { %1903 = vmatprep.subr.bf16.mxu1 %v2300_v0 }
 0x51c   : > { %1904 = vmatpush3.bf16.msra.mxu1 %v2030_v29 }
 0x51d   : > { %1905 = vmatprep.subr.bf16.mxu1 %v2300_v0 }
 0x520   : > { %1906 = vmatpush3.bf16.msra.mxu1 %v2031_v30 }
 0x5d3   : > { %v1326_v3 = vpop.f32.mrf.mxu1 }
 0x5d4   : > { %v1327_v4 = vadd.f32 %v1326_v3, %v1276_v2 }
 0x5d5   : > { %v1889_v6 = vpop.f32.mrf.mxu1 }
 0x5d6   : > { %v1332_v7 = vadd.f32 %v1327_v4, %v2598_v5 }
 0x5d7   : > { %v1329_v8 = vpop.f32.mrf.mxu1 }
 0x5d8   : > { %v1333_v9 = vsel %vm661_vm1, %v1332_v7, 0.0 }
 0x5d9   : > { %1334 = vadd.xlane.f32.xlu0 %v1333_v9  ;;  %v1890_v10 = vpop.f32.mrf.mxu1 }
 0x5da   : > { %v1763_v10 = vld [vmem:[%s2774_s10] ss:$0 sm:$0xff] }
 0x662   : > { %v1335_v11 = vpop.xlane.xlu0 %1334 }
 0x663   : > { %v1337_v12 = vmul.f32 0.03125, %v1335_v11 }
 0x665   : > { %v1338_v13 = vsub.f32 %v1332_v7, %v1337_v12 }
 0x667   : > { %v1339_v14 = vmul.f32 %v1338_v13, %v1338_v13 }
 0x669   : > { %v1340_v15 = vsel %vm661_vm1, %v1339_v14, 0.0 }
 0x66a   : > { %1341 = vadd.xlane.f32.xlu1 %v1340_v15 }
 0x6f3   : > { %v1342_v18 = vpop.xlane.xlu1 %1341 }
 0x6f4   : > { %v1343_v5 = vmul.f32 0.03125, %v1342_v18 }
 0x6f6   : > { %v1344_v19 = vadd.f32 1e-05, %v1343_v5 }
 0x6f8   : > { %2048 = vrsqrt.f32 %v1344_v19 }
 0x705   : > { %v2049_v20 = vpop.eup %2048 }
 0x706   : > { %v1346_v22 = vmul.f32 %v2049_v20, %v1338_v13 }
 0x708   : > { %v1353_v24 = vmul.f32 %v1756_v21, %v1346_v22 }
 0x70a   : > { %v2695_v25 = vadd.f32 %v1757_v23, %v1353_v24 }
 0x70c   : > { %v1361_v26 = vpack.c.bf16 %v2695_v25, %v2695_v25 }
 0x70e   : > { %1896 = vmatmul.mubr.msk.bf16.vlgmr.msra.gmra.mxu0 %vm661_vm1, %v1361_v26  ;;  %v1769_v26 = vld [vmem:[%s2777_s13] ss:$0 sm:$0xff] }
 0x7ce   : > { %v1417_v32 = vpop.f32.mrf.mxu0 }
 0x7cf   : > { %v1418_v33 = vadd.f32 %v1758_v31, %v1417_v32 }
 0x7d0   : > { %v1897_v34 = vpop.f32.mrf.mxu0 }
 0x7d1   : > { %v1424_v35 = vmul.f32 0.70710677, %v1418_v33  ;;  %v1423_v6 = vmul.f32 0.5, %v1418_v33 }
 0x7d2   : > { %v1420_v36 = vpop.f32.mrf.mxu0 }
 0x7d3   : > { %v1425_v37 = vand.u32 2147483647, %v1424_v35  ;;  %vm1454_vm6 = vcmp.ge.f32.partialorder %v1424_v35, 0.0 }
 0x7d4   : > { %v1898_v38 = vpop.f32.mrf.mxu0 }
 0x7d5   : > { %v1426_v39 = vmul.f32 0.5, %v1425_v37  ;;  %v1448_v57 = vsub.f32 0.0, %v1425_v37 }
 0x7d7   : > { %v1427_v40 = vadd.f32 1.0, %v1426_v39  ;;  %v1449_v60 = vmul.f32 %v1448_v57, %v1425_v37 }
 0x7d9   : > { %2050 = vrcp.f32 %v1427_v40 }
 0x7e6   : > { %v2051_v41 = vpop.eup %2050 }
 0x7e7   : > { %v1430_v42 = vmul.f32 0.17087276, %v2051_v41 }
 0x7e9   : > { %v1431_v43 = vadd.f32 -0.82215226, %v1430_v42 }
 0x7eb   : > { %v1432_v0 = vmul.f32 %v2051_v41, %v1431_v43 }
 0x7ed   : > { %v1433_v44 = vadd.f32 1.4885159, %v1432_v0 }
 0x7ef   : > { %v1434_v45 = vmul.f32 %v2051_v41, %v1433_v44 }
 0x7f1   : > { %v1435_v46 = vadd.f32 -1.135204, %v1434_v45 }
 0x7f3   : > { %v1436_v47 = vmul.f32 %v2051_v41, %v1435_v46 }
 0x7f5   : > { %v1437_v48 = vadd.f32 0.27886808, %v1436_v47 }
 0x7f7   : > { %v1438_v49 = vmul.f32 %v2051_v41, %v1437_v48 }
 0x7f9   : > { %v1439_v50 = vadd.f32 -0.18628806, %v1438_v49 }
 0x7fb   : > { %v1440_v51 = vmul.f32 %v2051_v41, %v1439_v50 }
 0x7fd   : > { %v1441_v52 = vadd.f32 0.09678418, %v1440_v51 }
 0x7ff   : > { %v1442_v53 = vmul.f32 %v2051_v41, %v1441_v52 }
 0x801   : > { %v1443_v54 = vadd.f32 0.37409195, %v1442_v53 }
 0x803   : > { %v1444_v55 = vmul.f32 %v2051_v41, %v1443_v54 }
 0x805   : > { %v1445_v56 = vadd.f32 1.0000237, %v1444_v55 }
 0x807   : > { %v1446_v58 = vmul.f32 %v2051_v41, %v1445_v56 }
 0x809   : > { %v1447_v59 = vadd.f32 -1.2655122, %v1446_v58 }
 0x80b   : > { %v1450_v61 = vadd.f32 %v1449_v60, %v1447_v59 }
 0x80d   : > { %v1451_v62 = vmul.f32 1.442695, %v1450_v61 }
 0x80f   : > { %2052 = vpow2.f32 %v1451_v62 }
 0x81c   : > { %v2053_v63 = vpop.eup %2052 }
 0x81d   : > { %v1453_v1 = vmul.f32 %v2053_v63, %v2051_v41 }
 0x81f   : > { %v1455_v2 = vsub.f32 1.0, %v1453_v1  ;;  %v1762_v3 = vadd.f32 -1.0, %v1453_v1 }
 0x821   : > { %v1457_v4 = vsel %vm1454_vm6, %v1455_v2, %v1762_v3 }
 0x822   : > { %v1458_v7 = vadd.f32 1.0, %v1457_v4 }
 0x824   : > { %v1459_v8 = vmul.f32 %v1458_v7, %v1423_v6 }
 0x826   : > { %v1460_v9 = vpack.c.bf16 %v1459_v8, %v1459_v8 }
 0x828   : > { %1908 = vmatmul.mubr.msk.bf16.vlgmr.msra.gmra.mxu1 %vm1491_vm7, %v1460_v9 }
 0x8e8   : > { %v1529_v11 = vpop.f32.mrf.mxu1 }
 0x8e9   : > { %v1530_v12 = vadd.f32 %v1763_v10, %v1529_v11 }
 0x8ea   : > { %v1909_v13 = vpop.f32.mrf.mxu1 }
 0x8eb   : > { %v1535_v14 = vadd.f32 %v1530_v12, %v2695_v25 }
 0x8ec   : > { %v1532_v15 = vpop.f32.mrf.mxu1 }
 0x8ed   : > { %v1536_v16 = vsel %vm661_vm1, %v1535_v14, 0.0 }
 0x8ee   : > { %1537 = vadd.xlane.f32.xlu0 %v1536_v16  ;;  %v1910_v17 = vpop.f32.mrf.mxu1 }
 0x977   : > { %v1538_v18 = vpop.xlane.xlu0 %1537 }
 0x978   : > { %v1539_v5 = vmul.f32 0.03125, %v1538_v18 }
 0x97a   : > { %v1540_v19 = vsub.f32 %v1535_v14, %v1539_v5 }
 0x97c   : > { %v1541_v20 = vmul.f32 %v1540_v19, %v1540_v19 }
 0x97e   : > { %v1542_v21 = vsel %vm661_vm1, %v1541_v20, 0.0 }
 0x97f   : > { %1543 = vadd.xlane.f32.xlu0 %v1542_v21 }
 0xa08   : > { %v1544_v22 = vpop.xlane.xlu0 %1543 }
 0xa09   : > { %v1545_v23 = vmul.f32 0.03125, %v1544_v22 }
 0xa0b   : > { %v1546_v24 = vadd.f32 1e-05, %v1545_v23 }
 0xa0d   : > { %2054 = vrsqrt.f32 %v1546_v24 }
 0xa1a   : > { %v2055_v25 = vpop.eup %2054 }
 0xa1b   : > { %v1548_v27 = vmul.f32 %v2055_v25, %v1540_v19 }
 0xa1d   : > { %v1555_v29 = vmul.f32 %v1769_v26, %v1548_v27 }
 0xa1f   : > { %v1562_v30 = vadd.f32 %v1770_v28, %v1555_v29 }
 0xa21   : > { %1563 = vst.msk [vmem:[%s603_s15] sm:$0xff] %vm661_vm1, %v1562_v30 }
 0xa22   : > { %2227 = shalt.err (!%p2224_p3)
}
 0xa23   : > { %s2228_s28 = scalar_lea.hbm %s1576_s17, 128  ;;  %s2232_s22 = scalar_lea.hbm %s2819_s8, 256 }
 0xa24   : > { %p2229_p4 = scmp.ne.s32.totalorder %s1576_s17, %s2228_s28  ;;  %p2233_p2 = scmp.lt.s32.totalorder %s1576_s17, %s2819_s8 }
 0xa25   : > { %p2234_p7 = scmp.lt.s32.totalorder %s2232_s22, %s2228_s28 }
 0xa26   : > { %p2230_p12 = pnand %p2229_p4, %p2820_p11 }
 0xa27   : > { %p2235_p8 = por %p2234_p7, %p2233_p2 }
 0xa28   : > { %p2231_p6 = pneg %p2230_p12 }
 0xa2a   : > { %p2236_p13 = pnand %p2235_p8, %p2231_p6 }
 0xa2c   : > { %2239 = shalt.err (!%p2236_p13)
}
 0xa2d   : > { %1933 = dma.vmem_to_hbm [thread:$0]  (%p2820_p11), %s1579_s23, 128, %s1576_s17, %s1565_s20  }
 0xa2e PF: > { %s1590_s15 = sand.u32 1, %s2278_s18   ;;  %p2821_p0 = scmp.ne.s32.totalorder %s2808_s29, 0 }
 0xa2f   : > { %p2822_p5 = scmp.ge.s32.totalorder %s2290_s21, 2  ;;  %s1591_s26 = scalar_lea.sflag [#allocation4], %s1590_s15 }
 0xa31   : > { %p1956_p9 = pnand %p2822_p5, %p2821_p0 }
 0xa33   : > { %p1957_p10 = pneg %p1956_p9 }
 0xa35   : > { %2273 = dma.done.wait (%p1957_p10), %s1591_s26, 128  }
 0xa36   : > { %2275 = vsyncadd (%p1957_p10), %s1591_s26, 4294967168  ;;  %s2823_s21 = sld [smem:[#allocation20_spill]]  ;;  %s2826_s18 = smov %s2282_s19 }
 0xa37   : > { %s2824_s14 = sld [smem:[#allocation19_spill]] }
 0xa38   : > { %s2825_s20 = sld [smem:[#allocation21_spill]] }
 0xa3c   : > { %p31_p1 = scmp.ge.s32.totalorder %s2823_s21, 4  }
 0xa3d   : > { %s2827_s19 = smov %s2824_s14 }
 0xa3e   :  { %33 = sbr.rel (!%p31_p1) target bundleno = 16 (0x10), region = 151 }
 0xa43   :  { %1596 = vsyncpa [#allocation3], 1 }
 0xa44   :  { %1598 = vsyncpa [#allocation3 + $0x1], 1 }
 0xa45   :  { %1599 = vsyncpa [#allocation6], 1 }
 0xa46   :  { %1600 = vsyncpa [#allocation9], 1 }
 0xa47   :  { %1601 = vsyncpa [#allocation12], 1 }
 0xa48   :  { %1602 = vsyncpa [#allocation4], 1 }
 0xa49   :  { %1604 = vsyncpa [#allocation4 + $0x1], 1 }

</bundles_post_ra>
